<compile_context>
chip_gen: v7x
topology: tpu7x:2x2x1
jax: 0.10.0
libtpu: 0.0.40
codegen_flags: <defaults>
</compile_context>

<pallas_src>
import functools

import jax
import jax.numpy as jnp
from jax.experimental import pallas as pl
from jax.experimental.pallas import tpu as pltpu


_TM = 1024  # rows per tile for the M = N*H*W axis (review: 512-2048)


def _round_up(a, b):
    return ((a + b - 1) // b) * b


def _tiling(m, tm=_TM):
    tm = min(tm, _round_up(m, 8))
    mp = _round_up(m, tm)
    return tm, mp


def _pad_rows(x2d, mp):
    m = x2d.shape[0]
    if mp == m:
        return x2d
    return jnp.pad(x2d, ((0, mp - m), (0, 0)))


_PARALLEL = pltpu.CompilerParams(dimension_semantics=("parallel",))


# ----------------------------------------------------------------------------
# Pallas kernels
# ----------------------------------------------------------------------------
def _mm_bias_kernel(x_ref, w_ref, b_ref, o_ref, *, relu):
    # y = x @ w + b [; relu]
    y = jnp.dot(x_ref[...], w_ref[...], preferred_element_type=jnp.float32)
    y = y + b_ref[...]
    if relu:
        y = jnp.maximum(y, 0.0)
    o_ref[...] = y.astype(o_ref.dtype)


def _mm_kernel(x_ref, w_ref, o_ref, *, relu):
    # y = x @ w [; relu]   (no bias input -> one fewer tiny DMA per step)
    y = jnp.dot(x_ref[...], w_ref[...], preferred_element_type=jnp.float32)
    if relu:
        y = jnp.maximum(y, 0.0)
    o_ref[...] = y.astype(o_ref.dtype)


def _conv_relu_conv_kernel(x_ref, w1_ref, b1_ref, w2_ref, o_ref):
    # g = relu(x @ w1 + b1) @ w2    (decoder level head, done at low res)
    a = jnp.dot(x_ref[...], w1_ref[...], preferred_element_type=jnp.float32)
    a = jnp.maximum(a + b1_ref[...], 0.0)
    o_ref[...] = jnp.dot(a, w2_ref[...],
                         preferred_element_type=jnp.float32).astype(o_ref.dtype)


def _decoder_tail_kernel(g_ref, p_ref, w2_ref, fb_ref, rw_ref, rb_ref, o_ref):
    # y   = relu(g + p @ f_w2 + f_b)          (concat-free f-conv)
    # out = relu(y + y @ r_w + r_b)           (fused residual block)
    y = jnp.dot(p_ref[...], w2_ref[...], preferred_element_type=jnp.float32)
    y = jnp.maximum(y + g_ref[...] + fb_ref[...], 0.0)
    z = jnp.dot(y, rw_ref[...], preferred_element_type=jnp.float32) + rb_ref[...]
    o_ref[...] = jnp.maximum(y + z, 0.0).astype(o_ref.dtype)


def _decoder_tail_sal_kernel(g_ref, p_ref, w2_ref, fb_ref, rw_ref, rb_ref,
                             sw_ref, sb_ref, o_ref):
    # Same as above, plus the final saliency 1x1 conv fused (Cout = 1); the
    # (M, out_chans) main flow never leaves VMEM.
    y = jnp.dot(p_ref[...], w2_ref[...], preferred_element_type=jnp.float32)
    y = jnp.maximum(y + g_ref[...] + fb_ref[...], 0.0)
    z = jnp.dot(y, rw_ref[...], preferred_element_type=jnp.float32) + rb_ref[...]
    r = jnp.maximum(y + z, 0.0)
    s = jnp.dot(r, sw_ref[...], preferred_element_type=jnp.float32) + sb_ref[...]
    o_ref[...] = s.astype(o_ref.dtype)


# ----------------------------------------------------------------------------
# Pallas wrappers (tiled over M, weights resident, parallel M axis)
# ----------------------------------------------------------------------------
def matmul2d(x2d, w, b=None, *, relu=False, tm=_TM):
    m, cin = x2d.shape
    cout = w.shape[1]
    tmm, mp = _tiling(m, tm)
    xp = _pad_rows(x2d, mp)
    grid = (mp // tmm,)
    if b is None:
        out = pl.pallas_call(
            functools.partial(_mm_kernel, relu=relu),
            out_shape=jax.ShapeDtypeStruct((mp, cout), jnp.float32),
            grid=grid,
            in_specs=[pl.BlockSpec((tmm, cin), lambda i: (i, 0)),
                      pl.BlockSpec((cin, cout), lambda i: (0, 0))],
            out_specs=pl.BlockSpec((tmm, cout), lambda i: (i, 0)),
            compiler_params=_PARALLEL,
        )(xp, w)
    else:
        out = pl.pallas_call(
            functools.partial(_mm_bias_kernel, relu=relu),
            out_shape=jax.ShapeDtypeStruct((mp, cout), jnp.float32),
            grid=grid,
            in_specs=[pl.BlockSpec((tmm, cin), lambda i: (i, 0)),
                      pl.BlockSpec((cin, cout), lambda i: (0, 0)),
                      pl.BlockSpec((1, cout), lambda i: (0, 0))],
            out_specs=pl.BlockSpec((tmm, cout), lambda i: (i, 0)),
            compiler_params=_PARALLEL,
        )(xp, w, b.reshape(1, cout))
    return out[:m] if mp != m else out


def conv1x1(x_nhwc, w, b, relu=False):
    """1x1 conv over NHWC == per-pixel channel matmul (tiled Pallas)."""
    n, h, wd, cin = x_nhwc.shape
    cout = w.shape[1]
    y = matmul2d(x_nhwc.reshape(n * h * wd, cin), w, b, relu=relu)
    return y.reshape(n, h, wd, cout)


def conv_relu_conv(x_nhwc, w1, b1, w2, tm=_TM):
    """g = relu(x @ w1 + b1) @ w2, fused, tiled over M (low-res decoder head)."""
    n, h, wd, cin = x_nhwc.shape
    mid = w1.shape[1]
    cout = w2.shape[1]
    m = n * h * wd
    tmm, mp = _tiling(m, tm)
    xp = _pad_rows(x_nhwc.reshape(m, cin), mp)
    out = pl.pallas_call(
        _conv_relu_conv_kernel,
        out_shape=jax.ShapeDtypeStruct((mp, cout), jnp.float32),
        grid=(mp // tmm,),
        in_specs=[pl.BlockSpec((tmm, cin), lambda i: (i, 0)),
                  pl.BlockSpec((cin, mid), lambda i: (0, 0)),
                  pl.BlockSpec((1, mid), lambda i: (0, 0)),
                  pl.BlockSpec((mid, cout), lambda i: (0, 0))],
        out_specs=pl.BlockSpec((tmm, cout), lambda i: (i, 0)),
        compiler_params=_PARALLEL,
    )(xp, w1, b1.reshape(1, mid), w2)
    out = out[:m] if mp != m else out
    return out.reshape(n, h, wd, cout)


def decoder_tail(gu, passthrough, f_w2, f_b, r_w, r_b,
                 sal_w=None, sal_b=None, tm=_TM):
    """Fused high-res decoder tail: f-conv (concat split) + residual block
    (+ optional fused saliency 1x1 conv for the last level)."""
    n, h, wd, oc = gu.shape
    pc = passthrough.shape[-1]
    m = n * h * wd
    tmm, mp = _tiling(m, tm)
    g2 = _pad_rows(gu.reshape(m, oc), mp)
    p2 = _pad_rows(passthrough.reshape(m, pc), mp)
    common_in = [
        pl.BlockSpec((tmm, oc), lambda i: (i, 0)),
        pl.BlockSpec((tmm, pc), lambda i: (i, 0)),
        pl.BlockSpec((pc, oc), lambda i: (0, 0)),
        pl.BlockSpec((1, oc), lambda i: (0, 0)),
        pl.BlockSpec((oc, oc), lambda i: (0, 0)),
        pl.BlockSpec((1, oc), lambda i: (0, 0)),
    ]
    if sal_w is None:
        out = pl.pallas_call(
            _decoder_tail_kernel,
            out_shape=jax.ShapeDtypeStruct((mp, oc), jnp.float32),
            grid=(mp // tmm,),
            in_specs=common_in,
            out_specs=pl.BlockSpec((tmm, oc), lambda i: (i, 0)),
            compiler_params=_PARALLEL,
        )(g2, p2, f_w2, f_b.reshape(1, oc), r_w, r_b.reshape(1, oc))
        out = out[:m] if mp != m else out
        return out.reshape(n, h, wd, oc)
    out = pl.pallas_call(
        _decoder_tail_sal_kernel,
        out_shape=jax.ShapeDtypeStruct((mp, 1), jnp.float32),
        grid=(mp // tmm,),
        in_specs=common_in + [pl.BlockSpec((oc, 1), lambda i: (0, 0)),
                              pl.BlockSpec((1, 1), lambda i: (0, 0))],
        out_specs=pl.BlockSpec((tmm, 1), lambda i: (i, 0)),
        compiler_params=_PARALLEL,
    )(g2, p2, f_w2, f_b.reshape(1, oc), r_w, r_b.reshape(1, oc),
      sal_w, sal_b.reshape(1, 1))
    out = out[:m] if mp != m else out
    return out.reshape(n, h, wd, 1)


# ----------------------------------------------------------------------------
# Bilinear upsample (batched, lane-dense) of the 1-channel saliency map
# ----------------------------------------------------------------------------
def _interp_matrix(out_size, in_size):
    """Row-interpolation matrix for bilinear resize (align_corners=False)."""
    scale = in_size / out_size
    i = jnp.arange(out_size, dtype=jnp.float32)
    src = jnp.clip((i + 0.5) * scale - 0.5, 0.0, in_size - 1)
    i0 = jnp.floor(src).astype(jnp.int32)
    i1 = jnp.minimum(i0 + 1, in_size - 1)
    w1 = src - i0.astype(jnp.float32)
    w0 = 1.0 - w1
    rows = jnp.arange(out_size)
    u = jnp.zeros((out_size, in_size), jnp.float32)
    u = u.at[rows, i0].add(w0)
    u = u.at[rows, i1].add(w1)
    return u


def bilinear_from_sal(sal_nhw1, hout, wout):
    """out[n] = Uh @ sal[n] @ Uw^T, as two batched lane-dense matmuls."""
    n, h, w, _ = sal_nhw1.shape
    uh = _interp_matrix(hout, h)            # (hout, h)
    uwt = _interp_matrix(wout, w).T         # (w, wout)
    sal2 = sal_nhw1.reshape(n * h, w)
    t = matmul2d(sal2, uwt)                 # (n*h, wout), W contraction batched
    t = t.reshape(n, h, wout).transpose(1, 0, 2).reshape(h, n * wout)
    o = matmul2d(uh, t)                     # (hout, n*wout), H contraction batched
    o = o.reshape(hout, n, wout).transpose(1, 0, 2)   # (n, hout, wout)
    return o.reshape(n, 1, hout, wout)


# ----------------------------------------------------------------------------
# Model glue (plain JAX)
# ----------------------------------------------------------------------------
def _avgpool2(x):
    n, h, w, c = x.shape
    return x.reshape(n, h // 2, 2, w // 2, 2, c).mean(axis=(2, 4))


def _nearest_up2(x):
    return jnp.repeat(jnp.repeat(x, 2, axis=1), 2, axis=2)


def saliency_forward(params, x_nchw, channel_dims):
    encoder_scales = len(channel_dims)
    upsampler_scales = encoder_scales - 2
    dim_chans = x_nchw.shape[-1]            # matches PyTorch: inputs.size()[-1]

    x = jnp.transpose(x_nchw, (0, 2, 3, 1))  # NCHW -> NHWC

    # --- encoder pyramid: out[i] has channel_dims[i-1] channels, H/2^i spatial
    # TODO(synk): 2x2 avg-pool left in XLA glue (not fused into the conv kernel).
    outs = [x]
    feat = x
    for i in range(encoder_scales):
        feat = _avgpool2(feat)
        w, b = params["enc"][i]
        feat = conv1x1(feat, w, b, relu=True)
        outs.append(feat)

    # --- decoder (exact loop structure from SaliencyModel.forward)
    down = encoder_scales
    main_flow = outs[down]
    sal = None
    for up in reversed(range(upsampler_scales)):
        assert down > 0
        p = params["up%d" % up]
        oc = p["up_w"].shape[1]
        f_w1 = p["f_w"][:oc]                # split concat: [up part | passthrough part]
        f_w2 = p["f_w"][oc:]
        # conv-before-upsample: low-res fused (up-conv + relu) @ f_w1
        g = conv_relu_conv(main_flow, p["up_w"], p["up_b"], f_w1)
        gu = _nearest_up2(g)                # small oc-channel tensor only
        passthrough = outs[down - 1]
        if up == 0:
            # last level: fuse saliency 1x1 conv, skip writing main_flow to HBM
            sal = decoder_tail(gu, passthrough, f_w2, p["f_b"], p["r_w"], p["r_b"],
                               sal_w=params["sal_w"], sal_b=params["sal_b"])
        else:
            main_flow = decoder_tail(gu, passthrough, f_w2, p["f_b"],
                                     p["r_w"], p["r_b"])
        down -= 1

    if sal is None:  # no decoder levels (not reached for len(channel_dims) >= 3)
        sal = conv1x1(main_flow, params["sal_w"], params["sal_b"], relu=False)

    # --- bilinear upsample to (dim_chans, dim_chans), NCHW output
    return bilinear_from_sal(sal, dim_chans, dim_chans)


# ----------------------------------------------------------------------------
# Deterministic parameter initialization (shapes follow SaliencyModel.__init__)
# ----------------------------------------------------------------------------
def init_params(key, in_ch, channel_dims):
    keys = iter(jax.random.split(key, 64))

    def dense(k, cin, cout):
        kw, kb = jax.random.split(k)
        w = jax.random.normal(kw, (cin, cout), jnp.float32) / jnp.sqrt(float(cin))
        b = 0.01 * jax.random.normal(kb, (cout,), jnp.float32)
        return w, b

    params = {}
    enc = []
    prev = in_ch
    for i in range(len(channel_dims)):
        enc.append(dense(next(keys), prev, channel_dims[i]))
        prev = channel_dims[i]
    params["enc"] = enc

    encoder_scales = len(channel_dims)
    upsampler_scales = encoder_scales - 2
    down = encoder_scales
    out_chans = 0
    for up in reversed(range(upsampler_scales)):
        inc = channel_dims[up + 2] if down == encoder_scales else out_chans
        out_chans = int(channel_dims[up + 1] / 4)
        passthrough = channel_dims[up + 1]
        up_w, up_b = dense(next(keys), inc, out_chans)
        f_w, f_b = dense(next(keys), out_chans + passthrough, out_chans)
        r_w, r_b = dense(next(keys), out_chans, out_chans)
        params["up%d" % up] = dict(
            up_w=up_w, up_b=up_b, f_w=f_w, f_b=f_b, r_w=r_w, r_b=r_b
        )
        down -= 1

    sal_w, sal_b = dense(next(keys), out_chans, 1)
    params["sal_w"], params["sal_b"] = sal_w, sal_b
    return params


# ----------------------------------------------------------------------------
if __name__ == "__main__":
    channel_dims = (4, 8, 16, 32)   # encoder_scales=4, upsampler_scales=2
    N, C, HW = 2, 4, 16

    key = jax.random.PRNGKey(0)
    kx, kp = jax.random.split(key)
    x = jax.random.normal(kx, (N, C, HW, HW), jnp.float32)   # NCHW like PyTorch
    params = init_params(kp, C, channel_dims)

    fwd = jax.jit(functools.partial(saliency_forward, channel_dims=channel_dims))
    out = fwd(params, x)
    jax.block_until_ready(out)

    assert out.shape == (N, 1, HW, HW), out.shape
    assert jnp.all(jnp.isfinite(out))
    print("KERNEL_OK")
</pallas_src>

<mosaic_0001>
module attributes {stable_mosaic.version = 11 : i64} {
  func.func private @main(%arg0: i32) attributes {dimension_semantics = [#tpu.dimension_semantics<core_parallel>], iteration_bounds = array<i64: 2>, tpu.core_type = #tpu.core_type<sc_scalar_subcore>, window_params = []} {
    return
  }
}

module attributes {stable_mosaic.version = 11 : i64} {
  func.func private @main(%arg0: i32) attributes {dimension_semantics = [#tpu.dimension_semantics<core_parallel>], iteration_bounds = array<i64: 2>, tpu.core_type = #tpu.core_type<sc_scalar_subcore>, window_params = []} {
    return
  }
}

module attributes {stable_mosaic.version = 11 : i64} {
  func.func @_mm_bias_kernel(%arg0: i32, %arg1: memref<128x4xf32, #tpu.memory_space<vmem>>, %arg2: memref<4x4xf32, #tpu.memory_space<vmem>>, %arg3: memref<1x4xf32, #tpu.memory_space<vmem>>, %arg4: memref<128x4xf32, #tpu.memory_space<vmem>>) attributes {dimension_semantics = [#tpu.dimension_semantics<parallel>], iteration_bounds = array<i64: 1>, scalar_prefetch = 0 : i64, scratch_operands = 0 : i64, tpu.core_type = #tpu.core_type<tc>, window_params = [{transform_indices = @transform_0, window_bounds = array<i64: 128, 4>}, {pipeline_mode = #tpu.pipeline_mode<synchronous>, transform_indices = @transform_1, window_bounds = array<i64: 4, 4>}, {pipeline_mode = #tpu.pipeline_mode<synchronous>, transform_indices = @transform_2, window_bounds = array<i64: 1, 4>}, {transform_indices = @transform_3, window_bounds = array<i64: 128, 4>}]} {
    %c0 = arith.constant 0 : index
    %c0_0 = arith.constant 0 : index
    %0 = vector.load %arg1[%c0, %c0_0] : memref<128x4xf32, #tpu.memory_space<vmem>>, vector<128x4xf32>
    %c0_1 = arith.constant 0 : index
    %c0_2 = arith.constant 0 : index
    %1 = vector.load %arg2[%c0_1, %c0_2] : memref<4x4xf32, #tpu.memory_space<vmem>>, vector<4x4xf32>
    %cst = arith.constant dense<0.000000e+00> : vector<128x4xf32>
    %2 = tpu.matmul %0, %1, %cst {dimension_numbers = #tpu.dot_dimension_numbers<[1], [0], [0], [1], [0, 0, 1, 1], [], []>} : vector<128x4xf32>, vector<4x4xf32>, vector<128x4xf32> -> vector<128x4xf32>
    %c0_3 = arith.constant 0 : index
    %c0_4 = arith.constant 0 : index
    %3 = vector.load %arg3[%c0_3, %c0_4] : memref<1x4xf32, #tpu.memory_space<vmem>>, vector<1x4xf32>
    %4 = vector.broadcast %3 : vector<1x4xf32> to vector<128x4xf32>
    %5 = arith.addf %2, %4 : vector<128x4xf32>
    %cst_5 = arith.constant 0.000000e+00 : f32
    %6 = vector.broadcast %cst_5 : f32 to vector<128x4xf32>
    %7 = arith.maximumf %5, %6 : vector<128x4xf32>
    %c0_6 = arith.constant 0 : index
    %c0_7 = arith.constant 0 : index
    %8 = vector.load %arg4[%c0_6, %c0_7] : memref<128x4xf32, #tpu.memory_space<vmem>>, vector<128x4xf32>
    tpu.vector_store %arg4[%c0_6, %c0_7], %7 {strides = array<i32>} : memref<128x4xf32, #tpu.memory_space<vmem>>, vector<128x4xf32>,
    return
  }
  func.func @transform_0(%arg0: i32) -> (i32, i32) {
    %c0_i32 = arith.constant 0 : i32
    %c0_i32_0 = arith.constant 0 : i32
    return %arg0, %c0_i32 : i32, i32
  }
  func.func @transform_1(%arg0: i32) -> (i32, i32) {
    %c0_i32 = arith.constant 0 : i32
    %c0_i32_0 = arith.constant 0 : i32
    %c0_i32_1 = arith.constant 0 : i32
    return %c0_i32, %c0_i32_0 : i32, i32
  }
  func.func @transform_2(%arg0: i32) -> (i32, i32) {
    %c0_i32 = arith.constant 0 : i32
    %c0_i32_0 = arith.constant 0 : i32
    %c0_i32_1 = arith.constant 0 : i32
    return %c0_i32, %c0_i32_0 : i32, i32
  }
  func.func @transform_3(%arg0: i32) -> (i32, i32) {
    %c0_i32 = arith.constant 0 : i32
    %c0_i32_0 = arith.constant 0 : i32
    return %arg0, %c0_i32 : i32, i32
  }
}

module attributes {stable_mosaic.version = 11 : i64} {
  func.func @_mm_bias_kernel(%arg0: i32, %arg1: memref<32x4xf32, #tpu.memory_space<vmem>>, %arg2: memref<4x8xf32, #tpu.memory_space<vmem>>, %arg3: memref<1x8xf32, #tpu.memory_space<vmem>>, %arg4: memref<32x8xf32, #tpu.memory_space<vmem>>) attributes {dimension_semantics = [#tpu.dimension_semantics<parallel>], iteration_bounds = array<i64: 1>, scalar_prefetch = 0 : i64, scratch_operands = 0 : i64, tpu.core_type = #tpu.core_type<tc>, window_params = [{transform_indices = @transform_0, window_bounds = array<i64: 32, 4>}, {pipeline_mode = #tpu.pipeline_mode<synchronous>, transform_indices = @transform_1, window_bounds = array<i64: 4, 8>}, {pipeline_mode = #tpu.pipeline_mode<synchronous>, transform_indices = @transform_2, window_bounds = array<i64: 1, 8>}, {transform_indices = @transform_3, window_bounds = array<i64: 32, 8>}]} {
    %c0 = arith.constant 0 : index
    %c0_0 = arith.constant 0 : index
    %0 = vector.load %arg1[%c0, %c0_0] : memref<32x4xf32, #tpu.memory_space<vmem>>, vector<32x4xf32>
    %c0_1 = arith.constant 0 : index
    %c0_2 = arith.constant 0 : index
    %1 = vector.load %arg2[%c0_1, %c0_2] : memref<4x8xf32, #tpu.memory_space<vmem>>, vector<4x8xf32>
    %cst = arith.constant dense<0.000000e+00> : vector<32x8xf32>
    %2 = tpu.matmul %0, %1, %cst {dimension_numbers = #tpu.dot_dimension_numbers<[1], [0], [0], [1], [0, 0, 1, 1], [], []>} : vector<32x4xf32>, vector<4x8xf32>, vector<32x8xf32> -> vector<32x8xf32>
    %c0_3 = arith.constant 0 : index
    %c0_4 = arith.constant 0 : index
    %3 = vector.load %arg3[%c0_3, %c0_4] : memref<1x8xf32, #tpu.memory_space<vmem>>, vector<1x8xf32>
    %4 = vector.broadcast %3 : vector<1x8xf32> to vector<32x8xf32>
    %5 = arith.addf %2, %4 : vector<32x8xf32>
    %cst_5 = arith.constant 0.000000e+00 : f32
    %6 = vector.broadcast %cst_5 : f32 to vector<32x8xf32>
    %7 = arith.maximumf %5, %6 : vector<32x8xf32>
    %c0_6 = arith.constant 0 : index
    %c0_7 = arith.constant 0 : index
    %8 = vector.load %arg4[%c0_6, %c0_7] : memref<32x8xf32, #tpu.memory_space<vmem>>, vector<32x8xf32>
    tpu.vector_store %arg4[%c0_6, %c0_7], %7 {strides = array<i32>} : memref<32x8xf32, #tpu.memory_space<vmem>>, vector<32x8xf32>,
    return
  }
  func.func @transform_0(%arg0: i32) -> (i32, i32) {
    %c0_i32 = arith.constant 0 : i32
    %c0_i32_0 = arith.constant 0 : i32
    return %arg0, %c0_i32 : i32, i32
  }
  func.func @transform_1(%arg0: i32) -> (i32, i32) {
    %c0_i32 = arith.constant 0 : i32
    %c0_i32_0 = arith.constant 0 : i32
    %c0_i32_1 = arith.constant 0 : i32
    return %c0_i32, %c0_i32_0 : i32, i32
  }
  func.func @transform_2(%arg0: i32) -> (i32, i32) {
    %c0_i32 = arith.constant 0 : i32
    %c0_i32_0 = arith.constant 0 : i32
    %c0_i32_1 = arith.constant 0 : i32
    return %c0_i32, %c0_i32_0 : i32, i32
  }
  func.func @transform_3(%arg0: i32) -> (i32, i32) {
    %c0_i32 = arith.constant 0 : i32
    %c0_i32_0 = arith.constant 0 : i32
    return %arg0, %c0_i32 : i32, i32
  }
}

module attributes {stable_mosaic.version = 11 : i64} {
  func.func @_mm_bias_kernel(%arg0: i32, %arg1: memref<8x8xf32, #tpu.memory_space<vmem>>, %arg2: memref<8x16xf32, #tpu.memory_space<vmem>>, %arg3: memref<1x16xf32, #tpu.memory_space<vmem>>, %arg4: memref<8x16xf32, #tpu.memory_space<vmem>>) attributes {dimension_semantics = [#tpu.dimension_semantics<parallel>], iteration_bounds = array<i64: 1>, scalar_prefetch = 0 : i64, scratch_operands = 0 : i64, tpu.core_type = #tpu.core_type<tc>, window_params = [{transform_indices = @transform_0, window_bounds = array<i64: 8, 8>}, {pipeline_mode = #tpu.pipeline_mode<synchronous>, transform_indices = @transform_1, window_bounds = array<i64: 8, 16>}, {pipeline_mode = #tpu.pipeline_mode<synchronous>, transform_indices = @transform_2, window_bounds = array<i64: 1, 16>}, {transform_indices = @transform_3, window_bounds = array<i64: 8, 16>}]} {
    %c0 = arith.constant 0 : index
    %c0_0 = arith.constant 0 : index
    %0 = vector.load %arg1[%c0, %c0_0] : memref<8x8xf32, #tpu.memory_space<vmem>>, vector<8x8xf32>
    %c0_1 = arith.constant 0 : index
    %c0_2 = arith.constant 0 : index
    %1 = vector.load %arg2[%c0_1, %c0_2] : memref<8x16xf32, #tpu.memory_space<vmem>>, vector<8x16xf32>
    %cst = arith.constant dense<0.000000e+00> : vector<8x16xf32>
    %2 = tpu.matmul %0, %1, %cst {dimension_numbers = #tpu.dot_dimension_numbers<[1], [0], [0], [1], [0, 0, 1, 1], [], []>} : vector<8x8xf32>, vector<8x16xf32>, vector<8x16xf32> -> vector<8x16xf32>
    %c0_3 = arith.constant 0 : index
    %c0_4 = arith.constant 0 : index
    %3 = vector.load %arg3[%c0_3, %c0_4] : memref<1x16xf32, #tpu.memory_space<vmem>>, vector<1x16xf32>
    %4 = vector.broadcast %3 : vector<1x16xf32> to vector<8x16xf32>
    %5 = arith.addf %2, %4 : vector<8x16xf32>
    %cst_5 = arith.constant 0.000000e+00 : f32
    %6 = vector.broadcast %cst_5 : f32 to vector<8x16xf32>
    %7 = arith.maximumf %5, %6 : vector<8x16xf32>
    %c0_6 = arith.constant 0 : index
    %c0_7 = arith.constant 0 : index
    %8 = vector.load %arg4[%c0_6, %c0_7] : memref<8x16xf32, #tpu.memory_space<vmem>>, vector<8x16xf32>
    tpu.vector_store %arg4[%c0_6, %c0_7], %7 {strides = array<i32>} : memref<8x16xf32, #tpu.memory_space<vmem>>, vector<8x16xf32>,
    return
  }
  func.func @transform_0(%arg0: i32) -> (i32, i32) {
    %c0_i32 = arith.constant 0 : i32
    %c0_i32_0 = arith.constant 0 : i32
    return %arg0, %c0_i32 : i32, i32
  }
  func.func @transform_1(%arg0: i32) -> (i32, i32) {
    %c0_i32 = arith.constant 0 : i32
    %c0_i32_0 = arith.constant 0 : i32
    %c0_i32_1 = arith.constant 0 : i32
    return %c0_i32, %c0_i32_0 : i32, i32
  }
  func.func @transform_2(%arg0: i32) -> (i32, i32) {
    %c0_i32 = arith.constant 0 : i32
    %c0_i32_0 = arith.constant 0 : i32
    %c0_i32_1 = arith.constant 0 : i32
    return %c0_i32, %c0_i32_0 : i32, i32
  }
  func.func @transform_3(%arg0: i32) -> (i32, i32) {
    %c0_i32 = arith.constant 0 : i32
    %c0_i32_0 = arith.constant 0 : i32
    return %arg0, %c0_i32 : i32, i32
  }
}

module attributes {stable_mosaic.version = 11 : i64} {
  func.func @_mm_bias_kernel(%arg0: i32, %arg1: memref<8x16xf32, #tpu.memory_space<vmem>>, %arg2: memref<16x32xf32, #tpu.memory_space<vmem>>, %arg3: memref<1x32xf32, #tpu.memory_space<vmem>>, %arg4: memref<8x32xf32, #tpu.memory_space<vmem>>) attributes {dimension_semantics = [#tpu.dimension_semantics<parallel>], iteration_bounds = array<i64: 1>, scalar_prefetch = 0 : i64, scratch_operands = 0 : i64, tpu.core_type = #tpu.core_type<tc>, window_params = [{transform_indices = @transform_0, window_bounds = array<i64: 8, 16>}, {pipeline_mode = #tpu.pipeline_mode<synchronous>, transform_indices = @transform_1, window_bounds = array<i64: 16, 32>}, {pipeline_mode = #tpu.pipeline_mode<synchronous>, transform_indices = @transform_2, window_bounds = array<i64: 1, 32>}, {transform_indices = @transform_3, window_bounds = array<i64: 8, 32>}]} {
    %c0 = arith.constant 0 : index
    %c0_0 = arith.constant 0 : index
    %0 = vector.load %arg1[%c0, %c0_0] : memref<8x16xf32, #tpu.memory_space<vmem>>, vector<8x16xf32>
    %c0_1 = arith.constant 0 : index
    %c0_2 = arith.constant 0 : index
    %1 = vector.load %arg2[%c0_1, %c0_2] : memref<16x32xf32, #tpu.memory_space<vmem>>, vector<16x32xf32>
    %cst = arith.constant dense<0.000000e+00> : vector<8x32xf32>
    %2 = tpu.matmul %0, %1, %cst {dimension_numbers = #tpu.dot_dimension_numbers<[1], [0], [0], [1], [0, 0, 1, 1], [], []>} : vector<8x16xf32>, vector<16x32xf32>, vector<8x32xf32> -> vector<8x32xf32>
    %c0_3 = arith.constant 0 : index
    %c0_4 = arith.constant 0 : index
    %3 = vector.load %arg3[%c0_3, %c0_4] : memref<1x32xf32, #tpu.memory_space<vmem>>, vector<1x32xf32>
    %4 = vector.broadcast %3 : vector<1x32xf32> to vector<8x32xf32>
    %5 = arith.addf %2, %4 : vector<8x32xf32>
    %cst_5 = arith.constant 0.000000e+00 : f32
    %6 = vector.broadcast %cst_5 : f32 to vector<8x32xf32>
    %7 = arith.maximumf %5, %6 : vector<8x32xf32>
    %c0_6 = arith.constant 0 : index
    %c0_7 = arith.constant 0 : index
    %8 = vector.load %arg4[%c0_6, %c0_7] : memref<8x32xf32, #tpu.memory_space<vmem>>, vector<8x32xf32>
    tpu.vector_store %arg4[%c0_6, %c0_7], %7 {strides = array<i32>} : memref<8x32xf32, #tpu.memory_space<vmem>>, vector<8x32xf32>,
    return
  }
  func.func @transform_0(%arg0: i32) -> (i32, i32) {
    %c0_i32 = arith.constant 0 : i32
    %c0_i32_0 = arith.constant 0 : i32
    return %arg0, %c0_i32 : i32, i32
  }
  func.func @transform_1(%arg0: i32) -> (i32, i32) {
    %c0_i32 = arith.constant 0 : i32
    %c0_i32_0 = arith.constant 0 : i32
    %c0_i32_1 = arith.constant 0 : i32
    return %c0_i32, %c0_i32_0 : i32, i32
  }
  func.func @transform_2(%arg0: i32) -> (i32, i32) {
    %c0_i32 = arith.constant 0 : i32
    %c0_i32_0 = arith.constant 0 : i32
    %c0_i32_1 = arith.constant 0 : i32
    return %c0_i32, %c0_i32_0 : i32, i32
  }
  func.func @transform_3(%arg0: i32) -> (i32, i32) {
    %c0_i32 = arith.constant 0 : i32
    %c0_i32_0 = arith.constant 0 : i32
    return %arg0, %c0_i32 : i32, i32
  }
}

module attributes {stable_mosaic.version = 11 : i64} {
  func.func @_conv_relu_conv_kernel(%arg0: i32, %arg1: memref<8x32xf32, #tpu.memory_space<vmem>>, %arg2: memref<32x4xf32, #tpu.memory_space<vmem>>, %arg3: memref<1x4xf32, #tpu.memory_space<vmem>>, %arg4: memref<4x4xf32, #tpu.memory_space<vmem>>, %arg5: memref<8x4xf32, #tpu.memory_space<vmem>>) attributes {dimension_semantics = [#tpu.dimension_semantics<parallel>], iteration_bounds = array<i64: 1>, scalar_prefetch = 0 : i64, scratch_operands = 0 : i64, tpu.core_type = #tpu.core_type<tc>, window_params = [{transform_indices = @transform_0, window_bounds = array<i64: 8, 32>}, {pipeline_mode = #tpu.pipeline_mode<synchronous>, transform_indices = @transform_1, window_bounds = array<i64: 32, 4>}, {pipeline_mode = #tpu.pipeline_mode<synchronous>, transform_indices = @transform_2, window_bounds = array<i64: 1, 4>}, {pipeline_mode = #tpu.pipeline_mode<synchronous>, transform_indices = @transform_3, window_bounds = array<i64: 4, 4>}, {transform_indices = @transform_4, window_bounds = array<i64: 8, 4>}]} {
    %c0 = arith.constant 0 : index
    %c0_0 = arith.constant 0 : index
    %0 = vector.load %arg1[%c0, %c0_0] : memref<8x32xf32, #tpu.memory_space<vmem>>, vector<8x32xf32>
    %c0_1 = arith.constant 0 : index
    %c0_2 = arith.constant 0 : index
    %1 = vector.load %arg2[%c0_1, %c0_2] : memref<32x4xf32, #tpu.memory_space<vmem>>, vector<32x4xf32>
    %cst = arith.constant dense<0.000000e+00> : vector<8x4xf32>
    %2 = tpu.matmul %0, %1, %cst {dimension_numbers = #tpu.dot_dimension_numbers<[1], [0], [0], [1], [0, 0, 1, 1], [], []>} : vector<8x32xf32>, vector<32x4xf32>, vector<8x4xf32> -> vector<8x4xf32>
    %c0_3 = arith.constant 0 : index
    %c0_4 = arith.constant 0 : index
    %3 = vector.load %arg3[%c0_3, %c0_4] : memref<1x4xf32, #tpu.memory_space<vmem>>, vector<1x4xf32>
    %4 = vector.broadcast %3 : vector<1x4xf32> to vector<8x4xf32>
    %5 = arith.addf %2, %4 : vector<8x4xf32>
    %cst_5 = arith.constant 0.000000e+00 : f32
    %6 = vector.broadcast %cst_5 : f32 to vector<8x4xf32>
    %7 = arith.maximumf %5, %6 : vector<8x4xf32>
    %c0_6 = arith.constant 0 : index
    %c0_7 = arith.constant 0 : index
    %8 = vector.load %arg4[%c0_6, %c0_7] : memref<4x4xf32, #tpu.memory_space<vmem>>, vector<4x4xf32>
    %cst_8 = arith.constant dense<0.000000e+00> : vector<8x4xf32>
    %9 = tpu.matmul %7, %8, %cst_8 {dimension_numbers = #tpu.dot_dimension_numbers<[1], [0], [0], [1], [0, 0, 1, 1], [], []>} : vector<8x4xf32>, vector<4x4xf32>, vector<8x4xf32> -> vector<8x4xf32>
    %c0_9 = arith.constant 0 : index
    %c0_10 = arith.constant 0 : index
    %10 = vector.load %arg5[%c0_9, %c0_10] : memref<8x4xf32, #tpu.memory_space<vmem>>, vector<8x4xf32>
    tpu.vector_store %arg5[%c0_9, %c0_10], %9 {strides = array<i32>} : memref<8x4xf32, #tpu.memory_space<vmem>>, vector<8x4xf32>,
    return
  }
  func.func @transform_0(%arg0: i32) -> (i32, i32) {
    %c0_i32 = arith.constant 0 : i32
    %c0_i32_0 = arith.constant 0 : i32
    return %arg0, %c0_i32 : i32, i32
  }
  func.func @transform_1(%arg0: i32) -> (i32, i32) {
    %c0_i32 = arith.constant 0 : i32
    %c0_i32_0 = arith.constant 0 : i32
    %c0_i32_1 = arith.constant 0 : i32
    return %c0_i32, %c0_i32_0 : i32, i32
  }
  func.func @transform_2(%arg0: i32) -> (i32, i32) {
    %c0_i32 = arith.constant 0 : i32
    %c0_i32_0 = arith.constant 0 : i32
    %c0_i32_1 = arith.constant 0 : i32
    return %c0_i32, %c0_i32_0 : i32, i32
  }
  func.func @transform_3(%arg0: i32) -> (i32, i32) {
    %c0_i32 = arith.constant 0 : i32
    %c0_i32_0 = arith.constant 0 : i32
    %c0_i32_1 = arith.constant 0 : i32
    return %c0_i32, %c0_i32_0 : i32, i32
  }
  func.func @transform_4(%arg0: i32) -> (i32, i32) {
    %c0_i32 = arith.constant 0 : i32
    %c0_i32_0 = arith.constant 0 : i32
    return %arg0, %c0_i32 : i32, i32
  }
}

module attributes {stable_mosaic.version = 11 : i64} {
  func.func @_conv_relu_conv_kernel(%arg0: i32, %arg1: memref<8x4xf32, #tpu.memory_space<vmem>>, %arg2: memref<4x2xf32, #tpu.memory_space<vmem>>, %arg3: memref<1x2xf32, #tpu.memory_space<vmem>>, %arg4: memref<2x2xf32, #tpu.memory_space<vmem>>, %arg5: memref<8x2xf32, #tpu.memory_space<vmem>>) attributes {dimension_semantics = [#tpu.dimension_semantics<parallel>], iteration_bounds = array<i64: 1>, scalar_prefetch = 0 : i64, scratch_operands = 0 : i64, tpu.core_type = #tpu.core_type<tc>, window_params = [{transform_indices = @transform_0, window_bounds = array<i64: 8, 4>}, {pipeline_mode = #tpu.pipeline_mode<synchronous>, transform_indices = @transform_1, window_bounds = array<i64: 4, 2>}, {pipeline_mode = #tpu.pipeline_mode<synchronous>, transform_indices = @transform_2, window_bounds = array<i64: 1, 2>}, {pipeline_mode = #tpu.pipeline_mode<synchronous>, transform_indices = @transform_3, window_bounds = array<i64: 2, 2>}, {transform_indices = @transform_4, window_bounds = array<i64: 8, 2>}]} {
    %c0 = arith.constant 0 : index
    %c0_0 = arith.constant 0 : index
    %0 = vector.load %arg1[%c0, %c0_0] : memref<8x4xf32, #tpu.memory_space<vmem>>, vector<8x4xf32>
    %c0_1 = arith.constant 0 : index
    %c0_2 = arith.constant 0 : index
    %1 = vector.load %arg2[%c0_1, %c0_2] : memref<4x2xf32, #tpu.memory_space<vmem>>, vector<4x2xf32>
    %cst = arith.constant dense<0.000000e+00> : vector<8x2xf32>
    %2 = tpu.matmul %0, %1, %cst {dimension_numbers = #tpu.dot_dimension_numbers<[1], [0], [0], [1], [0, 0, 1, 1], [], []>} : vector<8x4xf32>, vector<4x2xf32>, vector<8x2xf32> -> vector<8x2xf32>
    %c0_3 = arith.constant 0 : index
    %c0_4 = arith.constant 0 : index
    %3 = vector.load %arg3[%c0_3, %c0_4] : memref<1x2xf32, #tpu.memory_space<vmem>>, vector<1x2xf32>
    %4 = vector.broadcast %3 : vector<1x2xf32> to vector<8x2xf32>
    %5 = arith.addf %2, %4 : vector<8x2xf32>
    %cst_5 = arith.constant 0.000000e+00 : f32
    %6 = vector.broadcast %cst_5 : f32 to vector<8x2xf32>
    %7 = arith.maximumf %5, %6 : vector<8x2xf32>
    %c0_6 = arith.constant 0 : index
    %c0_7 = arith.constant 0 : index
    %8 = vector.load %arg4[%c0_6, %c0_7] : memref<2x2xf32, #tpu.memory_space<vmem>>, vector<2x2xf32>
    %cst_8 = arith.constant dense<0.000000e+00> : vector<8x2xf32>
    %9 = tpu.matmul %7, %8, %cst_8 {dimension_numbers = #tpu.dot_dimension_numbers<[1], [0], [0], [1], [0, 0, 1, 1], [], []>} : vector<8x2xf32>, vector<2x2xf32>, vector<8x2xf32> -> vector<8x2xf32>
    %c0_9 = arith.constant 0 : index
    %c0_10 = arith.constant 0 : index
    %10 = vector.load %arg5[%c0_9, %c0_10] : memref<8x2xf32, #tpu.memory_space<vmem>>, vector<8x2xf32>
    tpu.vector_store %arg5[%c0_9, %c0_10], %9 {strides = array<i32>} : memref<8x2xf32, #tpu.memory_space<vmem>>, vector<8x2xf32>,
    return
  }
  func.func @transform_0(%arg0: i32) -> (i32, i32) {
    %c0_i32 = arith.constant 0 : i32
    %c0_i32_0 = arith.constant 0 : i32
    return %arg0, %c0_i32 : i32, i32
  }
  func.func @transform_1(%arg0: i32) -> (i32, i32) {
    %c0_i32 = arith.constant 0 : i32
    %c0_i32_0 = arith.constant 0 : i32
    %c0_i32_1 = arith.constant 0 : i32
    return %c0_i32, %c0_i32_0 : i32, i32
  }
  func.func @transform_2(%arg0: i32) -> (i32, i32) {
    %c0_i32 = arith.constant 0 : i32
    %c0_i32_0 = arith.constant 0 : i32
    %c0_i32_1 = arith.constant 0 : i32
    return %c0_i32, %c0_i32_0 : i32, i32
  }
  func.func @transform_3(%arg0: i32) -> (i32, i32) {
    %c0_i32 = arith.constant 0 : i32
    %c0_i32_0 = arith.constant 0 : i32
    %c0_i32_1 = arith.constant 0 : i32
    return %c0_i32, %c0_i32_0 : i32, i32
  }
  func.func @transform_4(%arg0: i32) -> (i32, i32) {
    %c0_i32 = arith.constant 0 : i32
    %c0_i32_0 = arith.constant 0 : i32
    return %arg0, %c0_i32 : i32, i32
  }
}

module attributes {stable_mosaic.version = 11 : i64} {
  func.func @_decoder_tail_kernel(%arg0: i32, %arg1: memref<8x4xf32, #tpu.memory_space<vmem>>, %arg2: memref<8x16xf32, #tpu.memory_space<vmem>>, %arg3: memref<16x4xf32, #tpu.memory_space<vmem>>, %arg4: memref<1x4xf32, #tpu.memory_space<vmem>>, %arg5: memref<4x4xf32, #tpu.memory_space<vmem>>, %arg6: memref<1x4xf32, #tpu.memory_space<vmem>>, %arg7: memref<8x4xf32, #tpu.memory_space<vmem>>) attributes {dimension_semantics = [#tpu.dimension_semantics<parallel>], iteration_bounds = array<i64: 1>, scalar_prefetch = 0 : i64, scratch_operands = 0 : i64, tpu.core_type = #tpu.core_type<tc>, window_params = [{transform_indices = @transform_0, window_bounds = array<i64: 8, 4>}, {transform_indices = @transform_1, window_bounds = array<i64: 8, 16>}, {pipeline_mode = #tpu.pipeline_mode<synchronous>, transform_indices = @transform_2, window_bounds = array<i64: 16, 4>}, {pipeline_mode = #tpu.pipeline_mode<synchronous>, transform_indices = @transform_3, window_bounds = array<i64: 1, 4>}, {pipeline_mode = #tpu.pipeline_mode<synchronous>, transform_indices = @transform_4, window_bounds = array<i64: 4, 4>}, {pipeline_mode = #tpu.pipeline_mode<synchronous>, transform_indices = @transform_5, window_bounds = array<i64: 1, 4>}, {transform_indices = @transform_6, window_bounds = array<i64: 8, 4>}]} {
    %c0 = arith.constant 0 : index
    %c0_0 = arith.constant 0 : index
    %0 = vector.load %arg2[%c0, %c0_0] : memref<8x16xf32, #tpu.memory_space<vmem>>, vector<8x16xf32>
    %c0_1 = arith.constant 0 : index
    %c0_2 = arith.constant 0 : index
    %1 = vector.load %arg3[%c0_1, %c0_2] : memref<16x4xf32, #tpu.memory_space<vmem>>, vector<16x4xf32>
    %cst = arith.constant dense<0.000000e+00> : vector<8x4xf32>
    %2 = tpu.matmul %0, %1, %cst {dimension_numbers = #tpu.dot_dimension_numbers<[1], [0], [0], [1], [0, 0, 1, 1], [], []>} : vector<8x16xf32>, vector<16x4xf32>, vector<8x4xf32> -> vector<8x4xf32>
    %c0_3 = arith.constant 0 : index
    %c0_4 = arith.constant 0 : index
    %3 = vector.load %arg1[%c0_3, %c0_4] : memref<8x4xf32, #tpu.memory_space<vmem>>, vector<8x4xf32>
    %4 = arith.addf %2, %3 : vector<8x4xf32>
    %c0_5 = arith.constant 0 : index
    %c0_6 = arith.constant 0 : index
    %5 = vector.load %arg4[%c0_5, %c0_6] : memref<1x4xf32, #tpu.memory_space<vmem>>, vector<1x4xf32>
    %6 = vector.broadcast %5 : vector<1x4xf32> to vector<8x4xf32>
    %7 = arith.addf %4, %6 : vector<8x4xf32>
    %cst_7 = arith.constant 0.000000e+00 : f32
    %8 = vector.broadcast %cst_7 : f32 to vector<8x4xf32>
    %9 = arith.maximumf %7, %8 : vector<8x4xf32>
    %c0_8 = arith.constant 0 : index
    %c0_9 = arith.constant 0 : index
    %10 = vector.load %arg5[%c0_8, %c0_9] : memref<4x4xf32, #tpu.memory_space<vmem>>, vector<4x4xf32>
    %cst_10 = arith.constant dense<0.000000e+00> : vector<8x4xf32>
    %11 = tpu.matmul %9, %10, %cst_10 {dimension_numbers = #tpu.dot_dimension_numbers<[1], [0], [0], [1], [0, 0, 1, 1], [], []>} : vector<8x4xf32>, vector<4x4xf32>, vector<8x4xf32> -> vector<8x4xf32>
    %c0_11 = arith.constant 0 : index
    %c0_12 = arith.constant 0 : index
    %12 = vector.load %arg6[%c0_11, %c0_12] : memref<1x4xf32, #tpu.memory_space<vmem>>, vector<1x4xf32>
    %13 = vector.broadcast %12 : vector<1x4xf32> to vector<8x4xf32>
    %14 = arith.addf %11, %13 : vector<8x4xf32>
    %15 = arith.addf %9, %14 : vector<8x4xf32>
    %cst_13 = arith.constant 0.000000e+00 : f32
    %16 = vector.broadcast %cst_13 : f32 to vector<8x4xf32>
    %17 = arith.maximumf %15, %16 : vector<8x4xf32>
    %c0_14 = arith.constant 0 : index
    %c0_15 = arith.constant 0 : index
    %18 = vector.load %arg7[%c0_14, %c0_15] : memref<8x4xf32, #tpu.memory_space<vmem>>, vector<8x4xf32>
    tpu.vector_store %arg7[%c0_14, %c0_15], %17 {strides = array<i32>} : memref<8x4xf32, #tpu.memory_space<vmem>>, vector<8x4xf32>,
    return
  }
  func.func @transform_0(%arg0: i32) -> (i32, i32) {
    %c0_i32 = arith.constant 0 : i32
    %c0_i32_0 = arith.constant 0 : i32
    return %arg0, %c0_i32 : i32, i32
  }
  func.func @transform_1(%arg0: i32) -> (i32, i32) {
    %c0_i32 = arith.constant 0 : i32
    %c0_i32_0 = arith.constant 0 : i32
    return %arg0, %c0_i32 : i32, i32
  }
  func.func @transform_2(%arg0: i32) -> (i32, i32) {
    %c0_i32 = arith.constant 0 : i32
    %c0_i32_0 = arith.constant 0 : i32
    %c0_i32_1 = arith.constant 0 : i32
    return %c0_i32, %c0_i32_0 : i32, i32
  }
  func.func @transform_3(%arg0: i32) -> (i32, i32) {
    %c0_i32 = arith.constant 0 : i32
    %c0_i32_0 = arith.constant 0 : i32
    %c0_i32_1 = arith.constant 0 : i32
    return %c0_i32, %c0_i32_0 : i32, i32
  }
  func.func @transform_4(%arg0: i32) -> (i32, i32) {
    %c0_i32 = arith.constant 0 : i32
    %c0_i32_0 = arith.constant 0 : i32
    %c0_i32_1 = arith.constant 0 : i32
    return %c0_i32, %c0_i32_0 : i32, i32
  }
  func.func @transform_5(%arg0: i32) -> (i32, i32) {
    %c0_i32 = arith.constant 0 : i32
    %c0_i32_0 = arith.constant 0 : i32
    %c0_i32_1 = arith.constant 0 : i32
    return %c0_i32, %c0_i32_0 : i32, i32
  }
  func.func @transform_6(%arg0: i32) -> (i32, i32) {
    %c0_i32 = arith.constant 0 : i32
    %c0_i32_0 = arith.constant 0 : i32
    return %arg0, %c0_i32 : i32, i32
  }
}

module attributes {stable_mosaic.version = 11 : i64} {
  func.func @_decoder_tail_sal_kernel(%arg0: i32, %arg1: memref<32x2xf32, #tpu.memory_space<vmem>>, %arg2: memref<32x8xf32, #tpu.memory_space<vmem>>, %arg3: memref<8x2xf32, #tpu.memory_space<vmem>>, %arg4: memref<1x2xf32, #tpu.memory_space<vmem>>, %arg5: memref<2x2xf32, #tpu.memory_space<vmem>>, %arg6: memref<1x2xf32, #tpu.memory_space<vmem>>, %arg7: memref<2x1xf32, #tpu.memory_space<vmem>>, %arg8: memref<1x1xf32, #tpu.memory_space<vmem>>, %arg9: memref<32x1xf32, #tpu.memory_space<vmem>>) attributes {dimension_semantics = [#tpu.dimension_semantics<parallel>], iteration_bounds = array<i64: 1>, scalar_prefetch = 0 : i64, scratch_operands = 0 : i64, tpu.core_type = #tpu.core_type<tc>, window_params = [{transform_indices = @transform_0, window_bounds = array<i64: 32, 2>}, {transform_indices = @transform_1, window_bounds = array<i64: 32, 8>}, {pipeline_mode = #tpu.pipeline_mode<synchronous>, transform_indices = @transform_2, window_bounds = array<i64: 8, 2>}, {pipeline_mode = #tpu.pipeline_mode<synchronous>, transform_indices = @transform_3, window_bounds = array<i64: 1, 2>}, {pipeline_mode = #tpu.pipeline_mode<synchronous>, transform_indices = @transform_4, window_bounds = array<i64: 2, 2>}, {pipeline_mode = #tpu.pipeline_mode<synchronous>, transform_indices = @transform_5, window_bounds = array<i64: 1, 2>}, {pipeline_mode = #tpu.pipeline_mode<synchronous>, transform_indices = @transform_6, window_bounds = array<i64: 2, 1>}, {pipeline_mode = #tpu.pipeline_mode<synchronous>, transform_indices = @transform_7, window_bounds = array<i64: 1, 1>}, {transform_indices = @transform_8, window_bounds = array<i64: 32, 1>}]} {
    %c0 = arith.constant 0 : index
    %c0_0 = arith.constant 0 : index
    %0 = vector.load %arg2[%c0, %c0_0] : memref<32x8xf32, #tpu.memory_space<vmem>>, vector<32x8xf32>
    %c0_1 = arith.constant 0 : index
    %c0_2 = arith.constant 0 : index
    %1 = vector.load %arg3[%c0_1, %c0_2] : memref<8x2xf32, #tpu.memory_space<vmem>>, vector<8x2xf32>
    %cst = arith.constant dense<0.000000e+00> : vector<32x2xf32>
    %2 = tpu.matmul %0, %1, %cst {dimension_numbers = #tpu.dot_dimension_numbers<[1], [0], [0], [1], [0, 0, 1, 1], [], []>} : vector<32x8xf32>, vector<8x2xf32>, vector<32x2xf32> -> vector<32x2xf32>
    %c0_3 = arith.constant 0 : index
    %c0_4 = arith.constant 0 : index
    %3 = vector.load %arg1[%c0_3, %c0_4] : memref<32x2xf32, #tpu.memory_space<vmem>>, vector<32x2xf32>
    %4 = arith.addf %2, %3 : vector<32x2xf32>
    %c0_5 = arith.constant 0 : index
    %c0_6 = arith.constant 0 : index
    %5 = vector.load %arg4[%c0_5, %c0_6] : memref<1x2xf32, #tpu.memory_space<vmem>>, vector<1x2xf32>
    %6 = vector.broadcast %5 : vector<1x2xf32> to vector<32x2xf32>
    %7 = arith.addf %4, %6 : vector<32x2xf32>
    %cst_7 = arith.constant 0.000000e+00 : f32
    %8 = vector.broadcast %cst_7 : f32 to vector<32x2xf32>
    %9 = arith.maximumf %7, %8 : vector<32x2xf32>
    %c0_8 = arith.constant 0 : index
    %c0_9 = arith.constant 0 : index
    %10 = vector.load %arg5[%c0_8, %c0_9] : memref<2x2xf32, #tpu.memory_space<vmem>>, vector<2x2xf32>
    %cst_10 = arith.constant dense<0.000000e+00> : vector<32x2xf32>
    %11 = tpu.matmul %9, %10, %cst_10 {dimension_numbers = #tpu.dot_dimension_numbers<[1], [0], [0], [1], [0, 0, 1, 1], [], []>} : vector<32x2xf32>, vector<2x2xf32>, vector<32x2xf32> -> vector<32x2xf32>
    %c0_11 = arith.constant 0 : index
    %c0_12 = arith.constant 0 : index
    %12 = vector.load %arg6[%c0_11, %c0_12] : memref<1x2xf32, #tpu.memory_space<vmem>>, vector<1x2xf32>
    %13 = vector.broadcast %12 : vector<1x2xf32> to vector<32x2xf32>
    %14 = arith.addf %11, %13 : vector<32x2xf32>
    %15 = arith.addf %9, %14 : vector<32x2xf32>
    %cst_13 = arith.constant 0.000000e+00 : f32
    %16 = vector.broadcast %cst_13 : f32 to vector<32x2xf32>
    %17 = arith.maximumf %15, %16 : vector<32x2xf32>
    %c0_14 = arith.constant 0 : index
    %c0_15 = arith.constant 0 : index
    %18 = vector.load %arg7[%c0_14, %c0_15] : memref<2x1xf32, #tpu.memory_space<vmem>>, vector<2x1xf32>
    %cst_16 = arith.constant dense<0.000000e+00> : vector<32x1xf32>
    %19 = tpu.matmul %17, %18, %cst_16 {dimension_numbers = #tpu.dot_dimension_numbers<[1], [0], [0], [1], [0, 0, 1, 1], [], []>} : vector<32x2xf32>, vector<2x1xf32>, vector<32x1xf32> -> vector<32x1xf32>
    %c0_17 = arith.constant 0 : index
    %c0_18 = arith.constant 0 : index
    %20 = vector.load %arg8[%c0_17, %c0_18] : memref<1x1xf32, #tpu.memory_space<vmem>>, vector<1x1xf32>
    %21 = vector.broadcast %20 : vector<1x1xf32> to vector<32x1xf32>
    %22 = arith.addf %19, %21 : vector<32x1xf32>
    %c0_19 = arith.constant 0 : index
    %c0_20 = arith.constant 0 : index
    %23 = vector.load %arg9[%c0_19, %c0_20] : memref<32x1xf32, #tpu.memory_space<vmem>>, vector<32x1xf32>
    tpu.vector_store %arg9[%c0_19, %c0_20], %22 {strides = array<i32>} : memref<32x1xf32, #tpu.memory_space<vmem>>, vector<32x1xf32>,
    return
  }
  func.func @transform_0(%arg0: i32) -> (i32, i32) {
    %c0_i32 = arith.constant 0 : i32
    %c0_i32_0 = arith.constant 0 : i32
    return %arg0, %c0_i32 : i32, i32
  }
  func.func @transform_1(%arg0: i32) -> (i32, i32) {
    %c0_i32 = arith.constant 0 : i32
    %c0_i32_0 = arith.constant 0 : i32
    return %arg0, %c0_i32 : i32, i32
  }
  func.func @transform_2(%arg0: i32) -> (i32, i32) {
    %c0_i32 = arith.constant 0 : i32
    %c0_i32_0 = arith.constant 0 : i32
    %c0_i32_1 = arith.constant 0 : i32
    return %c0_i32, %c0_i32_0 : i32, i32
  }
  func.func @transform_3(%arg0: i32) -> (i32, i32) {
    %c0_i32 = arith.constant 0 : i32
    %c0_i32_0 = arith.constant 0 : i32
    %c0_i32_1 = arith.constant 0 : i32
    return %c0_i32, %c0_i32_0 : i32, i32
  }
  func.func @transform_4(%arg0: i32) -> (i32, i32) {
    %c0_i32 = arith.constant 0 : i32
    %c0_i32_0 = arith.constant 0 : i32
    %c0_i32_1 = arith.constant 0 : i32
    return %c0_i32, %c0_i32_0 : i32, i32
  }
  func.func @transform_5(%arg0: i32) -> (i32, i32) {
    %c0_i32 = arith.constant 0 : i32
    %c0_i32_0 = arith.constant 0 : i32
    %c0_i32_1 = arith.constant 0 : i32
    return %c0_i32, %c0_i32_0 : i32, i32
  }
  func.func @transform_6(%arg0: i32) -> (i32, i32) {
    %c0_i32 = arith.constant 0 : i32
    %c0_i32_0 = arith.constant 0 : i32
    %c0_i32_1 = arith.constant 0 : i32
    return %c0_i32, %c0_i32_0 : i32, i32
  }
  func.func @transform_7(%arg0: i32) -> (i32, i32) {
    %c0_i32 = arith.constant 0 : i32
    %c0_i32_0 = arith.constant 0 : i32
    %c0_i32_1 = arith.constant 0 : i32
    return %c0_i32, %c0_i32_0 : i32, i32
  }
  func.func @transform_8(%arg0: i32) -> (i32, i32) {
    %c0_i32 = arith.constant 0 : i32
    %c0_i32_0 = arith.constant 0 : i32
    return %arg0, %c0_i32 : i32, i32
  }
}

module attributes {stable_mosaic.version = 11 : i64} {
  func.func @_mm_kernel(%arg0: i32, %arg1: memref<8x4xf32, #tpu.memory_space<vmem>>, %arg2: memref<4x16xf32, #tpu.memory_space<vmem>>, %arg3: memref<8x16xf32, #tpu.memory_space<vmem>>) attributes {dimension_semantics = [#tpu.dimension_semantics<parallel>], iteration_bounds = array<i64: 1>, scalar_prefetch = 0 : i64, scratch_operands = 0 : i64, tpu.core_type = #tpu.core_type<tc>, window_params = [{transform_indices = @transform_0, window_bounds = array<i64: 8, 4>}, {pipeline_mode = #tpu.pipeline_mode<synchronous>, transform_indices = @transform_1, window_bounds = array<i64: 4, 16>}, {transform_indices = @transform_2, window_bounds = array<i64: 8, 16>}]} {
    %c0 = arith.constant 0 : index
    %c0_0 = arith.constant 0 : index
    %0 = vector.load %arg1[%c0, %c0_0] : memref<8x4xf32, #tpu.memory_space<vmem>>, vector<8x4xf32>
    %c0_1 = arith.constant 0 : index
    %c0_2 = arith.constant 0 : index
    %1 = vector.load %arg2[%c0_1, %c0_2] : memref<4x16xf32, #tpu.memory_space<vmem>>, vector<4x16xf32>
    %cst = arith.constant dense<0.000000e+00> : vector<8x16xf32>
    %2 = tpu.matmul %0, %1, %cst {dimension_numbers = #tpu.dot_dimension_numbers<[1], [0], [0], [1], [0, 0, 1, 1], [], []>} : vector<8x4xf32>, vector<4x16xf32>, vector<8x16xf32> -> vector<8x16xf32>
    %c0_3 = arith.constant 0 : index
    %c0_4 = arith.constant 0 : index
    %3 = vector.load %arg3[%c0_3, %c0_4] : memref<8x16xf32, #tpu.memory_space<vmem>>, vector<8x16xf32>
    tpu.vector_store %arg3[%c0_3, %c0_4], %2 {strides = array<i32>} : memref<8x16xf32, #tpu.memory_space<vmem>>, vector<8x16xf32>,
    return
  }
  func.func @transform_0(%arg0: i32) -> (i32, i32) {
    %c0_i32 = arith.constant 0 : i32
    %c0_i32_0 = arith.constant 0 : i32
    return %arg0, %c0_i32 : i32, i32
  }
  func.func @transform_1(%arg0: i32) -> (i32, i32) {
    %c0_i32 = arith.constant 0 : i32
    %c0_i32_0 = arith.constant 0 : i32
    %c0_i32_1 = arith.constant 0 : i32
    return %c0_i32, %c0_i32_0 : i32, i32
  }
  func.func @transform_2(%arg0: i32) -> (i32, i32) {
    %c0_i32 = arith.constant 0 : i32
    %c0_i32_0 = arith.constant 0 : i32
    return %arg0, %c0_i32 : i32, i32
  }
}

module attributes {stable_mosaic.version = 11 : i64} {
  func.func @_mm_kernel(%arg0: i32, %arg1: memref<16x4xf32, #tpu.memory_space<vmem>>, %arg2: memref<4x32xf32, #tpu.memory_space<vmem>>, %arg3: memref<16x32xf32, #tpu.memory_space<vmem>>) attributes {dimension_semantics = [#tpu.dimension_semantics<parallel>], iteration_bounds = array<i64: 1>, scalar_prefetch = 0 : i64, scratch_operands = 0 : i64, tpu.core_type = #tpu.core_type<tc>, window_params = [{transform_indices = @transform_0, window_bounds = array<i64: 16, 4>}, {pipeline_mode = #tpu.pipeline_mode<synchronous>, transform_indices = @transform_1, window_bounds = array<i64: 4, 32>}, {transform_indices = @transform_2, window_bounds = array<i64: 16, 32>}]} {
    %c0 = arith.constant 0 : index
    %c0_0 = arith.constant 0 : index
    %0 = vector.load %arg1[%c0, %c0_0] : memref<16x4xf32, #tpu.memory_space<vmem>>, vector<16x4xf32>
    %c0_1 = arith.constant 0 : index
    %c0_2 = arith.constant 0 : index
    %1 = vector.load %arg2[%c0_1, %c0_2] : memref<4x32xf32, #tpu.memory_space<vmem>>, vector<4x32xf32>
    %cst = arith.constant dense<0.000000e+00> : vector<16x32xf32>
    %2 = tpu.matmul %0, %1, %cst {dimension_numbers = #tpu.dot_dimension_numbers<[1], [0], [0], [1], [0, 0, 1, 1], [], []>} : vector<16x4xf32>, vector<4x32xf32>, vector<16x32xf32> -> vector<16x32xf32>
    %c0_3 = arith.constant 0 : index
    %c0_4 = arith.constant 0 : index
    %3 = vector.load %arg3[%c0_3, %c0_4] : memref<16x32xf32, #tpu.memory_space<vmem>>, vector<16x32xf32>
    tpu.vector_store %arg3[%c0_3, %c0_4], %2 {strides = array<i32>} : memref<16x32xf32, #tpu.memory_space<vmem>>, vector<16x32xf32>,
    return
  }
  func.func @transform_0(%arg0: i32) -> (i32, i32) {
    %c0_i32 = arith.constant 0 : i32
    %c0_i32_0 = arith.constant 0 : i32
    return %arg0, %c0_i32 : i32, i32
  }
  func.func @transform_1(%arg0: i32) -> (i32, i32) {
    %c0_i32 = arith.constant 0 : i32
    %c0_i32_0 = arith.constant 0 : i32
    %c0_i32_1 = arith.constant 0 : i32
    return %c0_i32, %c0_i32_0 : i32, i32
  }
  func.func @transform_2(%arg0: i32) -> (i32, i32) {
    %c0_i32 = arith.constant 0 : i32
    %c0_i32_0 = arith.constant 0 : i32
    return %arg0, %c0_i32 : i32, i32
  }
}

</mosaic_0001>

<bundles_post_ra>
// kernel: saliency_forward.10
= control target key start
LH: loop header
LB: loop body
LE: loop exit
PB: predicated region body
PF: predicated region fallthrough
CT: control target
= control target key end

     0   :  { %vm87_vm0 = vcmask 1043456   ;;  %vm38_vm1 = vcmask 31744   ;;  %s489_s1 = inlined_call_operand.vmem [shape: f32[4,4], index: 1, kind: input, shape index: {}]   ;;  %s490_s0 = inlined_call_operand.vmem [shape: f32[128,4], index: 0, kind: input, shape index: {}]   ;;  %s491_s2 = inlined_call_operand.vmem [shape: f32[1,4], index: 2, kind: input, shape index: {}]   ;;  %s492_s3 = inlined_call_operand.vmem [shape: f32[128,4], index: 3, kind: output, shape index: {}]  }
   0x1   :  { %v30_v0 = vld [vmem:[%s489_s1] sm:$0xf]  ;;  %v15_v3 = vld [vmem:[%s490_s0 + $0x8] sm:$0xff]  ;;  %v16_v5 = vld [vmem:[%s490_s0 + $0x10] sm:$0xff] }
   0x2   :  { %v14_v1 = vld [vmem:[%s490_s0] sm:$0xff]  ;;  %307 = vmatprep.subr.msk.mxu0 %vm87_vm0, %v30_v0  ;;  %333 = vmatprep.subr.msk.mxu1 %vm87_vm0, %v30_v0  ;;  %v23_v4 = vld [vmem:[%s490_s0 + $0x48] sm:$0xff]  ;;  %v24_v6 = vld [vmem:[%s490_s0 + $0x50] sm:$0xff] }
   0x3   :  { %v22_v2 = vld [vmem:[%s490_s0 + $0x40] sm:$0xff]  ;;  %308 = vmatpush3.msk.msra.mxu0 %vm87_vm0, %v30_v0  ;;  %334 = vmatpush3.msk.msra.mxu1 %vm87_vm0, %v30_v0  ;;  %v17_v7 = vld [vmem:[%s490_s0 + $0x18] sm:$0xff]  ;;  %v19_v11 = vld [vmem:[%s490_s0 + $0x28] sm:$0xff] }
   0x4   :  { %309 = vmatprep.mubr.msk.f32.mxu0 %vm38_vm1, %v14_v1  ;;  %321 = vmatprep.mubr.msk.f32.mxu1 %vm38_vm1, %v22_v2  ;;  %v25_v8 = vld [vmem:[%s490_s0 + $0x58] sm:$0xff]  ;;  %v18_v9 = vld [vmem:[%s490_s0 + $0x20] sm:$0xff]  ;;  %v27_v12 = vld [vmem:[%s490_s0 + $0x68] sm:$0xff] }
   0x5   :  { %310 = vmatmul.mubr.msk.f32.vlgmr.msra.gmra.mrb[0].mxu0 %vm38_vm1, %v15_v3  ;;  %322 = vmatmul.mubr.msk.f32.vlgmr.msra.gmra.mrb[0].mxu1 %vm38_vm1, %v23_v4  ;;  %v26_v10 = vld [vmem:[%s490_s0 + $0x60] sm:$0xff]  ;;  %v20_v13 = vld [vmem:[%s490_s0 + $0x30] sm:$0xff]  ;;  %v21_v15 = vld [vmem:[%s490_s0 + $0x38] sm:$0xff] }
   0x6   :  { %312 = vmatprep.mubr.msk.f32.mxu0 %vm38_vm1, %v16_v5  ;;  %324 = vmatprep.mubr.msk.f32.mxu1 %vm38_vm1, %v24_v6  ;;  %v28_v14 = vld [vmem:[%s490_s0 + $0x70] sm:$0xff]  ;;  %v29_v16 = vld [vmem:[%s490_s0 + $0x78] sm:$0xff]  ;;  %v272_v17 = vld [vmem:[%s491_s2] ss:$0 sm:$0xff] }
   0x9   :  { %313 = vmatmul.mubr.msk.f32.gmra.mrb[2].mxu0 %vm38_vm1, %v17_v7  ;;  %325 = vmatmul.mubr.msk.f32.gmra.mrb[2].mxu1 %vm38_vm1, %v25_v8 }
   0xa   :  { %315 = vmatprep.mubr.msk.f32.mxu0 %vm38_vm1, %v18_v9  ;;  %327 = vmatprep.mubr.msk.f32.mxu1 %vm38_vm1, %v26_v10 }
   0xd   :  { %316 = vmatmul.mubr.msk.f32.gmra.mrb[4].mxu0 %vm38_vm1, %v19_v11  ;;  %328 = vmatmul.mubr.msk.f32.gmra.mrb[4].mxu1 %vm38_vm1, %v27_v12 }
   0xe   :  { %318 = vmatprep.mubr.msk.f32.mxu0 %vm38_vm1, %v20_v13  ;;  %330 = vmatprep.mubr.msk.f32.mxu1 %vm38_vm1, %v28_v14 }
  0x11   :  { %319 = vmatmul.mubr.msk.f32.gmra.mrb[6].mxu0 %vm38_vm1, %v21_v15  ;;  %331 = vmatmul.mubr.msk.f32.gmra.mrb[6].mxu1 %vm38_vm1, %v29_v16 }
  0xd8   :  { %v311_v18 = vpop.f32.mrb[0].mxu0  ;;  %v323_v19 = vpop.f32.mrb[0].mxu1 }
  0xd9   :  { %v163_v20 = vadd.f32 %v311_v18, %v272_v17  ;;  %v203_v21 = vadd.f32 %v323_v19, %v272_v17  ;;  %v157_v22 = vpop.f32.mrb[1].mxu0  ;;  %v197_v23 = vpop.f32.mrb[1].mxu1 }
  0xda   :  { %v158_v24 = vadd.f32 %v272_v17, %v157_v22  ;;  %v198_v25 = vadd.f32 %v272_v17, %v197_v23 }
  0xdb   :  { %v237_v26 = vmax.f32 %v163_v20, 0.0  ;;  %v245_v27 = vmax.f32 %v203_v21, 0.0 }
  0xdc   :  { %v236_v28 = vmax.f32 %v158_v24, 0.0  ;;  %v244_v29 = vmax.f32 %v198_v25, 0.0  ;;  %v314_v30 = vpop.f32.mrb[2].mxu0  ;;  %v326_v31 = vpop.f32.mrb[2].mxu1 }
  0xdd   :  { %253 = vst.msk [vmem:[%s492_s3 + $0x8] sm:$0xff] %vm38_vm1, %v237_v26  ;;  %261 = vst.msk [vmem:[%s492_s3 + $0x48] sm:$0xff] %vm38_vm1, %v245_v27  ;;  %v173_v32 = vadd.f32 %v314_v30, %v272_v17  ;;  %v213_v33 = vadd.f32 %v326_v31, %v272_v17  ;;  %v167_v34 = vpop.f32.mrb[3].mxu0  ;;  %v207_v35 = vpop.f32.mrb[3].mxu1 }
  0xde   :  { %252 = vst.msk [vmem:[%s492_s3] sm:$0xff] %vm38_vm1, %v236_v28  ;;  %260 = vst.msk [vmem:[%s492_s3 + $0x40] sm:$0xff] %vm38_vm1, %v244_v29  ;;  %v168_v36 = vadd.f32 %v272_v17, %v167_v34  ;;  %v208_v37 = vadd.f32 %v272_v17, %v207_v35 }
  0xdf   :  { %v239_v38 = vmax.f32 %v173_v32, 0.0  ;;  %v247_v39 = vmax.f32 %v213_v33, 0.0 }
  0xe0   :  { %v238_v40 = vmax.f32 %v168_v36, 0.0  ;;  %v246_v41 = vmax.f32 %v208_v37, 0.0  ;;  %v317_v42 = vpop.f32.mrb[4].mxu0  ;;  %v329_v43 = vpop.f32.mrb[4].mxu1 }
  0xe1   :  { %255 = vst.msk [vmem:[%s492_s3 + $0x18] sm:$0xff] %vm38_vm1, %v239_v38  ;;  %263 = vst.msk [vmem:[%s492_s3 + $0x58] sm:$0xff] %vm38_vm1, %v247_v39  ;;  %v183_v44 = vadd.f32 %v317_v42, %v272_v17  ;;  %v223_v45 = vadd.f32 %v329_v43, %v272_v17  ;;  %v177_v46 = vpop.f32.mrb[5].mxu0  ;;  %v217_v47 = vpop.f32.mrb[5].mxu1 }
  0xe2   :  { %254 = vst.msk [vmem:[%s492_s3 + $0x10] sm:$0xff] %vm38_vm1, %v238_v40  ;;  %262 = vst.msk [vmem:[%s492_s3 + $0x50] sm:$0xff] %vm38_vm1, %v246_v41  ;;  %v178_v48 = vadd.f32 %v272_v17, %v177_v46  ;;  %v218_v49 = vadd.f32 %v272_v17, %v217_v47 }
  0xe3   :  { %v241_v50 = vmax.f32 %v183_v44, 0.0  ;;  %v249_v51 = vmax.f32 %v223_v45, 0.0 }
  0xe4   :  { %v240_v52 = vmax.f32 %v178_v48, 0.0  ;;  %v248_v53 = vmax.f32 %v218_v49, 0.0  ;;  %v320_v54 = vpop.f32.mrb[6].mxu0  ;;  %v332_v55 = vpop.f32.mrb[6].mxu1 }
  0xe5   :  { %257 = vst.msk [vmem:[%s492_s3 + $0x28] sm:$0xff] %vm38_vm1, %v241_v50  ;;  %265 = vst.msk [vmem:[%s492_s3 + $0x68] sm:$0xff] %vm38_vm1, %v249_v51  ;;  %v193_v56 = vadd.f32 %v320_v54, %v272_v17  ;;  %v233_v57 = vadd.f32 %v332_v55, %v272_v17  ;;  %v187_v58 = vpop.f32.mrb[7].mxu0  ;;  %v227_v59 = vpop.f32.mrb[7].mxu1 }
  0xe6   :  { %256 = vst.msk [vmem:[%s492_s3 + $0x20] sm:$0xff] %vm38_vm1, %v240_v52  ;;  %264 = vst.msk [vmem:[%s492_s3 + $0x60] sm:$0xff] %vm38_vm1, %v248_v53  ;;  %v188_v60 = vadd.f32 %v272_v17, %v187_v58  ;;  %v228_v61 = vadd.f32 %v272_v17, %v227_v59 }
  0xe7   :  { %v243_v62 = vmax.f32 %v193_v56, 0.0  ;;  %v251_v63 = vmax.f32 %v233_v57, 0.0 }
  0xe8   :  { %v242_v0 = vmax.f32 %v188_v60, 0.0  ;;  %v250_v1 = vmax.f32 %v228_v61, 0.0 }
  0xe9   :  { %259 = vst.msk [vmem:[%s492_s3 + $0x38] sm:$0xff] %vm38_vm1, %v243_v62  ;;  %267 = vst.msk [vmem:[%s492_s3 + $0x78] sm:$0xff] %vm38_vm1, %v251_v63 }
  0xea   :  { %258 = vst.msk [vmem:[%s492_s3 + $0x30] sm:$0xff] %vm38_vm1, %v242_v0  ;;  %266 = vst.msk [vmem:[%s492_s3 + $0x70] sm:$0xff] %vm38_vm1, %v250_v1 }

// kernel: saliency_forward.11
= control target key start
LH: loop header
LB: loop body
LE: loop exit
PB: predicated region body
PF: predicated region fallthrough
CT: control target
= control target key end

     0   :  { %vm39_vm0 = vcmask 1043456   ;;  %vm26_vm1 = vcmask 31744   ;;  %vm132_vm2 = vcmask 64512   ;;  %s212_s1 = inlined_call_operand.vmem [shape: f32[4,8], index: 1, kind: input, shape index: {}]   ;;  %s213_s0 = inlined_call_operand.vmem [shape: f32[32,4], index: 0, kind: input, shape index: {}]   ;;  %s214_s2 = inlined_call_operand.vmem [shape: f32[1,8], index: 2, kind: input, shape index: {}]   ;;  %s215_s3 = inlined_call_operand.vmem [shape: f32[32,8], index: 3, kind: output, shape index: {}]  }
   0x1   :  { %v18_v0 = vld [vmem:[%s212_s1] sm:$0xf]  ;;  %v16_v2 = vld [vmem:[%s213_s0 + $0x10] sm:$0xff]  ;;  %v15_v3 = vld [vmem:[%s213_s0 + $0x8] sm:$0xff] }
   0x2   :  { %v14_v1 = vld [vmem:[%s213_s0] sm:$0xff]  ;;  %152 = vmatprep.subr.msk.mxu0 %vm39_vm0, %v18_v0  ;;  %160 = vmatprep.subr.msk.mxu1 %vm39_vm0, %v18_v0  ;;  %v17_v4 = vld [vmem:[%s213_s0 + $0x18] sm:$0xff] }
   0x3   :  { %153 = vmatpush3.msk.msra.mxu0 %vm39_vm0, %v18_v0  ;;  %161 = vmatpush3.msk.msra.mxu1 %vm39_vm0, %v18_v0  ;;  %v141_v5 = vld [vmem:[%s214_s2] ss:$0 sm:$0xff] }
   0x4   :  { %154 = vmatprep.mubr.msk.f32.mxu0 %vm26_vm1, %v14_v1  ;;  %157 = vmatprep.mubr.msk.f32.mxu1 %vm26_vm1, %v16_v2 }
   0x5   :  { %155 = vmatmul.mubr.msk.f32.vlgmr.msra.gmra.mrb[0].mxu0 %vm26_vm1, %v15_v3  ;;  %158 = vmatmul.mubr.msk.f32.vlgmr.msra.gmra.mrb[0].mxu1 %vm26_vm1, %v17_v4 }
  0xd8   :  { %v156_v6 = vpop.f32.mrb[0].mxu0  ;;  %v159_v7 = vpop.f32.mrb[0].mxu1 }
  0xd9   :  { %v115_v8 = vadd.f32 %v156_v6, %v141_v5  ;;  %v125_v9 = vadd.f32 %v159_v7, %v141_v5  ;;  %v109_v10 = vpop.f32.mrb[1].mxu0  ;;  %v119_v11 = vpop.f32.mrb[1].mxu1 }
  0xda   :  { %v110_v12 = vadd.f32 %v141_v5, %v109_v10  ;;  %v120_v13 = vadd.f32 %v141_v5, %v119_v11 }
  0xdb   :  { %v129_v14 = vmax.f32 %v115_v8, 0.0  ;;  %v131_v15 = vmax.f32 %v125_v9, 0.0 }
  0xdc   :  { %v128_v16 = vmax.f32 %v110_v12, 0.0  ;;  %v130_v17 = vmax.f32 %v120_v13, 0.0 }
  0xdd   :  { %134 = vst.msk [vmem:[%s215_s3 + $0x8] sm:$0xff] %vm132_vm2, %v129_v14  ;;  %136 = vst.msk [vmem:[%s215_s3 + $0x18] sm:$0xff] %vm132_vm2, %v131_v15 }
  0xde   :  { %133 = vst.msk [vmem:[%s215_s3] sm:$0xff] %vm132_vm2, %v128_v16  ;;  %135 = vst.msk [vmem:[%s215_s3 + $0x10] sm:$0xff] %vm132_vm2, %v130_v17 }

// kernel: saliency_forward.12
= control target key start
LH: loop header
LB: loop body
LE: loop exit
PB: predicated region body
PF: predicated region fallthrough
CT: control target
= control target key end

     0   :  { %vm23_vm0 = vcmask 64512   ;;  %v115_v0 = vmov 0.0   ;;  %vm116_vm1 = vmmov 0   ;;  %vm98_vm2 = vcmask 130048   ;;  %s149_s1 = inlined_call_operand.vmem [shape: f32[8,16], index: 1, kind: input, shape index: {}]   ;;  %s150_s0 = inlined_call_operand.vmem [shape: f32[8,8], index: 0, kind: input, shape index: {}]   ;;  %s151_s2 = inlined_call_operand.vmem [shape: f32[1,16], index: 2, kind: input, shape index: {}]   ;;  %s152_s3 = inlined_call_operand.vmem [shape: f32[8,16], index: 3, kind: output, shape index: {}]  }
   0x1   :  { %108 = vmatprep.subr.mxu0 %v115_v0  ;;  %v15_v1 = vld [vmem:[%s149_s1] sm:$0xff]  ;;  %110 = vmatprep.mubr.msk.f32.mxu0 %vm116_vm1, %v115_v0 }
   0x2   :  { %v14_v2 = vld [vmem:[%s150_s0] sm:$0xff]  ;;  %109 = vmatpush3.msra.mxu0 %v15_v1 }
   0x3   :  { %111 = vmatmul.mubr.msk.f32.vlgmr.msra.gmra.mrb[0].mxu0 %vm23_vm0, %v14_v2  ;;  %v104_v3 = vld [vmem:[%s151_s2] ss:$0 sm:$0xff] }
  0xd6   :  { %v93_v4 = vpop.f32.mrb[0].mxu0 }
  0xd7   :  { %v94_v5 = vadd.f32 %v104_v3, %v93_v4  ;;  %v112_v6 = vpop.f32.mrb[1].mxu0 }
  0xd9   :  { %v97_v7 = vmax.f32 %v94_v5, 0.0 }
  0xdb   :  { %99 = vst.msk [vmem:[%s152_s3] sm:$0xff] %vm98_vm2, %v97_v7 }

// kernel: saliency_forward.13
= control target key start
LH: loop header
LB: loop body
LE: loop exit
PB: predicated region body
PF: predicated region fallthrough
CT: control target
= control target key end

     0   :  { %v123_v0 = vmov 0.0|0.0   ;;  %vm124_vm0 = vmmov 0   ;;  %v125_v3 = vmov 0.0   ;;  %vm24_vm1 = vcmask 130048   ;;  %s161_s1 = inlined_call_operand.vmem [shape: f32[16,32], index: 1, kind: input, shape index: {}]   ;;  %s162_s0 = inlined_call_operand.vmem [shape: f32[8,16], index: 0, kind: input, shape index: {}]   ;;  %s163_s2 = inlined_call_operand.vmem [shape: f32[1,32], index: 2, kind: input, shape index: {}]   ;;  %s164_s3 = inlined_call_operand.vmem [shape: f32[8,32], index: 3, kind: output, shape index: {}]  }
   0x1   :  { %117 = vmatprep.subr.bf16.mxu0 %v123_v0  ;;  %v15_v1 = vld [vmem:[%s161_s1] sm:$0xff]  ;;  %v16_v2 = vld [vmem:[%s161_s1 + $0x8] sm:$0xff]  ;;  %114 = vmatprep.mubr.msk.f32.mxu0 %vm124_vm0, %v125_v3  ;;  %vm99_vm2 = vcmask 261120  }
   0x2   :  { %v118_v4 = vpack.c.bf16 %v16_v2, %v15_v1  ;;  %v14_v5 = vld [vmem:[%s162_s0] sm:$0xff] }
   0x3   :  { %v105_v6 = vld [vmem:[%s163_s2] ss:$0 sm:$0xff] }
   0x4   :  { %119 = vmatpush3.bf16.msra.mxu0 %v118_v4 }
   0x7   :  { %115 = vmatmul.mubr.msk.f32.vlgmr.msra.gmra.mrb[0].mxu0 %vm24_vm1, %v14_v5 }
  0xda   :  { %v94_v7 = vpop.f32.mrb[0].mxu0 }
  0xdb   :  { %v95_v8 = vadd.f32 %v105_v6, %v94_v7  ;;  %v116_v9 = vpop.f32.mrb[1].mxu0 }
  0xdd   :  { %v98_v10 = vmax.f32 %v95_v8, 0.0 }
  0xdf   :  { %100 = vst.msk [vmem:[%s164_s3] sm:$0xff] %vm99_vm2, %v98_v10 }

// kernel: saliency_forward.16
= control target key start
LH: loop header
LB: loop body
LE: loop exit
PB: predicated region body
PF: predicated region fallthrough
CT: control target
= control target key end

     0   :  { %vm30_vm0 = vcmask 1043456   ;;  %vm26_vm1 = vcmask 31744   ;;  %v210_v0 = vmov 0.0   ;;  %vm211_vm2 = vmmov 0   ;;  %s252_s1 = inlined_call_operand.vmem [shape: f32[4,2], index: 1, kind: input, shape index: {}]   ;;  %s253_s0 = inlined_call_operand.vmem [shape: f32[8,4], index: 0, kind: input, shape index: {}]   ;;  %s254_s3 = inlined_call_operand.vmem [shape: f32[2,2], index: 3, kind: input, shape index: {}]   ;;  %s255_s2 = inlined_call_operand.vmem [shape: f32[1,2], index: 2, kind: input, shape index: {}]   ;;  %s256_s4 = inlined_call_operand.vmem [shape: f32[8,2], index: 4, kind: output, shape index: {}]  }
   0x1   :  { %198 = vmatprep.subr.mxu0 %v210_v0  ;;  %v18_v1 = vld [vmem:[%s252_s1] sm:$0xf]  ;;  %200 = vmatprep.mubr.msk.f32.mxu0 %vm211_vm2, %v210_v0  ;;  %vm110_vm3 = vcmask 1041408   ;;  %vm106_vm4 = vcmask 15360  }
   0x2   :  { %v17_v2 = vld [vmem:[%s253_s0] sm:$0xff]  ;;  %199 = vmatpush3.msk.msra.mxu0 %vm30_vm0, %v18_v1  ;;  %203 = vmatprep.subr.mxu1 %v210_v0 }
   0x3   :  { %201 = vmatmul.mubr.msk.f32.vlgmr.msra.gmra.mrb[0].mxu0 %vm26_vm1, %v17_v2  ;;  %205 = vmatprep.mubr.msk.f32.mxu1 %vm211_vm2, %v210_v0  ;;  %v105_v3 = vld [vmem:[%s254_s3] sm:$0x3] }
   0x4   :  { %204 = vmatpush3.msk.msra.mxu1 %vm110_vm3, %v105_v3  ;;  %v189_v4 = vld [vmem:[%s255_s2] ss:$0 sm:$0xff] }
  0xd6   :  { %v100_v5 = vpop.f32.mrb[0].mxu0 }
  0xd7   :  { %v101_v6 = vadd.f32 %v189_v4, %v100_v5  ;;  %v202_v7 = vpop.f32.mrb[1].mxu0 }
  0xd9   :  { %v104_v8 = vmax.f32 %v101_v6, 0.0 }
  0xdb   :  { %206 = vmatmul.mubr.msk.f32.vlgmr.msra.gmra.mrb[0].mxu1 %vm106_vm4, %v104_v8 }
 0x1ae   :  { %v180_v9 = vpop.f32.mrb[0].mxu1 }
 0x1af   :  { %184 = vst.msk [vmem:[%s256_s4] sm:$0xff] %vm106_vm4, %v180_v9  ;;  %v207_v10 = vpop.f32.mrb[1].mxu1 }

// kernel: saliency_forward.14
= control target key start
LH: loop header
LB: loop body
LE: loop exit
PB: predicated region body
PF: predicated region fallthrough
CT: control target
= control target key end

     0   :  { %v224_v0 = vmov 0.0|0.0   ;;  %vm225_vm0 = vmmov 0   ;;  %v226_v4 = vmov 0.0   ;;  %vm29_vm1 = vcmask 261120   ;;  %s276_s1 = inlined_call_operand.vmem [shape: f32[32,4], index: 1, kind: input, shape index: {}]   ;;  %s277_s0 = inlined_call_operand.vmem [shape: f32[8,32], index: 0, kind: input, shape index: {}]   ;;  %s278_s3 = inlined_call_operand.vmem [shape: f32[4,4], index: 3, kind: input, shape index: {}]   ;;  %s279_s2 = inlined_call_operand.vmem [shape: f32[1,4], index: 2, kind: input, shape index: {}]   ;;  %s280_s4 = inlined_call_operand.vmem [shape: f32[8,4], index: 4, kind: output, shape index: {}]  }
   0x1   :  { %215 = vmatprep.subr.bf16.mxu0 %v224_v0  ;;  %v18_v1 = vld [vmem:[%s276_s1] sm:$0xff]  ;;  %v19_v2 = vld [vmem:[%s276_s1 + $0x8] sm:$0xff]  ;;  %v20_v3 = vld [vmem:[%s276_s1 + $0x10] sm:$0xff]  ;;  %207 = vmatprep.mubr.msk.f32.mxu0 %vm225_vm0, %v226_v4  ;;  %vm109_vm2 = vcmask 1043456   ;;  %vm105_vm3 = vcmask 31744  }
   0x2   :  { %v216_v5 = vpack.c.bf16 %v19_v2, %v18_v1  ;;  %v21_v6 = vld [vmem:[%s276_s1 + $0x18] sm:$0xff]  ;;  %210 = vmatprep.subr.mxu1 %v226_v4  ;;  %212 = vmatprep.mubr.msk.f32.mxu1 %vm225_vm0, %v226_v4  ;;  %v17_v8 = vld [vmem:[%s277_s0] sm:$0xff] }
   0x3   :  { %v219_v7 = vpack.c.bf16 %v21_v6, %v20_v3  ;;  %v104_v9 = vld [vmem:[%s278_s3] sm:$0xf] }
   0x4   :  { %217 = vmatpush3.bf16.msra.mxu0 %v216_v5  ;;  %211 = vmatpush3.msk.msra.mxu1 %vm109_vm2, %v104_v9  ;;  %v188_v10 = vld [vmem:[%s279_s2] ss:$0 sm:$0xff] }
   0x5   :  { %218 = vmatprep.subr.bf16.mxu0 %v224_v0 }
   0x8   :  { %220 = vmatpush3.bf16.msra.mxu0 %v219_v7 }
   0xb   :  { %208 = vmatmul.mubr.msk.f32.vlgmr.msra.gmra.mrb[0].mxu0 %vm29_vm1, %v17_v8 }
  0xde   :  { %v99_v11 = vpop.f32.mrb[0].mxu0 }
  0xdf   :  { %v100_v12 = vadd.f32 %v188_v10, %v99_v11  ;;  %v209_v13 = vpop.f32.mrb[1].mxu0 }
  0xe1   :  { %v103_v14 = vmax.f32 %v100_v12, 0.0 }
  0xe3   :  { %213 = vmatmul.mubr.msk.f32.vlgmr.msra.gmra.mrb[0].mxu1 %vm105_vm3, %v103_v14 }
 0x1b6   :  { %v179_v15 = vpop.f32.mrb[0].mxu1 }
 0x1b7   :  { %183 = vst.msk [vmem:[%s280_s4] sm:$0xff] %vm105_vm3, %v179_v15  ;;  %v214_v16 = vpop.f32.mrb[1].mxu1 }

// kernel: saliency_forward.15
= control target key start
LH: loop header
LB: loop body
LE: loop exit
PB: predicated region body
PF: predicated region fallthrough
CT: control target
= control target key end

     0   :  { %v231_v0 = vmov 0.0|0.0   ;;  %vm232_vm0 = vmmov 0   ;;  %v233_v3 = vmov 0.0   ;;  %vm27_vm1 = vcmask 130048   ;;  %s293_s2 = inlined_call_operand.vmem [shape: f32[16,4], index: 2, kind: input, shape index: {}]   ;;  %s294_s1 = inlined_call_operand.vmem [shape: f32[8,16], index: 1, kind: input, shape index: {}]   ;;  %s295_s4 = inlined_call_operand.vmem [shape: f32[4,4], index: 4, kind: input, shape index: {}]   ;;  %s296_s0 = inlined_call_operand.vmem [shape: f32[8,4], index: 0, kind: input, shape index: {}]   ;;  %s297_s3 = inlined_call_operand.vmem [shape: f32[1,4], index: 3, kind: input, shape index: {}]   ;;  %s298_s5 = inlined_call_operand.vmem [shape: f32[1,4], index: 5, kind: input, shape index: {}]   ;;  %s299_s6 = inlined_call_operand.vmem [shape: f32[8,4], index: 6, kind: output, shape index: {}]  }
   0x1   :  { %225 = vmatprep.subr.bf16.mxu0 %v231_v0  ;;  %v24_v1 = vld [vmem:[%s293_s2] sm:$0xff]  ;;  %v25_v2 = vld [vmem:[%s293_s2 + $0x8] sm:$0xff]  ;;  %217 = vmatprep.mubr.msk.f32.mxu0 %vm232_vm0, %v233_v3  ;;  %vm122_vm2 = vcmask 1043456   ;;  %vm118_vm3 = vcmask 31744  }
   0x2   :  { %v226_v4 = vpack.c.bf16 %v25_v2, %v24_v1  ;;  %220 = vmatprep.subr.mxu1 %v233_v3  ;;  %222 = vmatprep.mubr.msk.f32.mxu1 %vm232_vm0, %v233_v3  ;;  %v23_v5 = vld [vmem:[%s294_s1] sm:$0xff] }
   0x3   :  { %v110_v6 = vld [vmem:[%s295_s4] sm:$0xf] }
   0x4   :  { %227 = vmatpush3.bf16.msra.mxu0 %v226_v4  ;;  %221 = vmatpush3.msk.msra.mxu1 %vm122_vm2, %v110_v6  ;;  %v26_v7 = vld [vmem:[%s296_s0] sm:$0xff] }
   0x5   :  { %v204_v9 = vld [vmem:[%s297_s3] ss:$0 sm:$0xff] }
   0x6   :  { %v205_v14 = vld [vmem:[%s298_s5] ss:$0 sm:$0xff] }
   0x7   :  { %218 = vmatmul.mubr.msk.f32.vlgmr.msra.gmra.mrb[0].mxu0 %vm27_vm1, %v23_v5 }
  0xda   :  { %v97_v8 = vpop.f32.mrb[0].mxu0 }
  0xdb   :  { %v98_v10 = vadd.f32 %v97_v8, %v26_v7  ;;  %v219_v11 = vpop.f32.mrb[1].mxu0 }
  0xdd   :  { %v108_v12 = vadd.f32 %v204_v9, %v98_v10 }
  0xdf   :  { %v109_v13 = vmax.f32 %v108_v12, 0.0 }
  0xe1   :  { %223 = vmatmul.mubr.msk.f32.vlgmr.msra.gmra.mrb[0].mxu1 %vm118_vm3, %v109_v13 }
 0x1b4   :  { %v192_v15 = vpop.f32.mrb[0].mxu1 }
 0x1b5   :  { %v193_v16 = vadd.f32 %v205_v14, %v192_v15  ;;  %v224_v17 = vpop.f32.mrb[1].mxu1 }
 0x1b7   :  { %v196_v18 = vadd.f32 %v193_v16, %v109_v13 }
 0x1b9   :  { %v197_v19 = vmax.f32 %v196_v18, 0.0 }
 0x1bb   :  { %198 = vst.msk [vmem:[%s299_s6] sm:$0xff] %vm118_vm3, %v197_v19 }

// kernel: saliency_forward.18
= control target key start
LH: loop header
LB: loop body
LE: loop exit
PB: predicated region body
PF: predicated region fallthrough
CT: control target
= control target key end

     0   :  { %7 = vsyncpa [#allocation3], 0  ;;  %s146_s9 = smov [#allocation2]   ;;  %s182_s0 = inlined_call_operand.vmem [shape: f32[8,4], index: 0, kind: input, shape index: {}]   ;;  %s183_s1 = inlined_call_operand.hbm [shape: f32[4,16], index: 1, kind: input, shape index: {}]   ;;  %s184_s2 = inlined_call_operand.vmem [shape: f32[8,16], index: 2, kind: output, shape index: {}]  }
   0x1   :  { %s16_s10 = sshll.u32 %s146_s9, 4  ;;  %s122_s13 = scalar_lea.hbm %s183_s1, 64  ;;  %s17_s10 = int_to_ptr.vmem [resolvable:$true] %s16_s10 }
   0x2   :  { %p123_p0 = scmp.ne.s32.totalorder %s183_s1, %s122_s13  ;;  %p126_p1 = scmp.lt.u32.totalorder %s122_s13, %s183_s1 }
   0x4   :  { %p128_p2 = pnand %p126_p1, %p123_p0 }
   0x6   :  { %131 = shalt.err (!%p128_p2)
}
   0x7   :  { %s132_s18 = scalar_lea.vmem %s17_s10, 64  ;;  %p137_p4 = scmp.lt.s32.totalorder %s17_s10, %s17_s10 }
   0x8   :  { %p133_p3 = scmp.ne.s32.totalorder %s17_s10, %s132_s18  ;;  %p138_p5 = scmp.lt.s32.totalorder %s132_s18, %s132_s18 }
   0xa   :  { %p139_p6 = por %p138_p5, %p137_p4 }
   0xc   :  { %p140_p7 = pnand %p139_p6, %p133_p3 }
   0xe   :  { %143 = shalt.err (!%p140_p7)
}
   0xf   :  { %19 = dma.hbm_to_vmem [thread:$0]  %s183_s1, 64, %s17_s10, [#allocation3]  }
  0x10   :  { %144 = dma.done.wait [#allocation3], 64  }
  0x11   :  { %145 = vsyncadd [#allocation3], 4294967232  ;;  %v147_v0 = vmov 0.0   ;;  %vm148_vm0 = vmmov 0   ;;  %vm29_vm1 = vcmask 1043456   ;;  %vm25_vm2 = vcmask 31744  }
  0x12   :  { %114 = vmatprep.subr.mxu0 %v147_v0  ;;  %116 = vmatprep.mubr.msk.f32.mxu0 %vm148_vm0, %v147_v0  ;;  %v24_v1 = vld [vmem:[#allocation2] sm:$0xf]  ;;  %vm103_vm3 = vcmask 130048  }
  0x13   :  { %v23_v2 = vld [vmem:[%s182_s0] sm:$0xff]  ;;  %115 = vmatpush3.msk.msra.mxu0 %vm29_vm1, %v24_v1 }
  0x14   :  { %117 = vmatmul.mubr.msk.f32.vlgmr.msra.gmra.mrb[0].mxu0 %vm25_vm2, %v23_v2 }
  0xe7   :  { %v99_v3 = vpop.f32.mrb[0].mxu0 }
  0xe8   :  { %104 = vst.msk [vmem:[%s184_s2] sm:$0xff] %vm103_vm3, %v99_v3  ;;  %v118_v4 = vpop.f32.mrb[1].mxu0 }
  0xe9   :  { %109 = vsyncpa [#allocation3], 1 }

// kernel: saliency_forward.19
= control target key start
LH: loop header
LB: loop body
LE: loop exit
PB: predicated region body
PF: predicated region fallthrough
CT: control target
= control target key end

     0   :  { %vm21_vm0 = vcmask 1043456   ;;  %vm14_vm1 = vcmask 31744   ;;  %vm100_vm2 = vcmask 261120   ;;  %s148_s1 = inlined_call_operand.vmem [shape: f32[4,32], index: 1, kind: input, shape index: {}]   ;;  %s149_s0 = inlined_call_operand.vmem [shape: f32[16,4], index: 0, kind: input, shape index: {}]   ;;  %s150_s2 = inlined_call_operand.vmem [shape: f32[16,32], index: 2, kind: output, shape index: {}]  }
   0x1   :  { %v13_v0 = vld [vmem:[%s148_s1] sm:$0xf]  ;;  %v12_v2 = vld [vmem:[%s149_s0 + $0x8] sm:$0xff] }
   0x2   :  { %v11_v1 = vld [vmem:[%s149_s0] sm:$0xff]  ;;  %113 = vmatprep.subr.msk.mxu0 %vm21_vm0, %v13_v0 }
   0x3   :  { %115 = vmatprep.mubr.msk.f32.mxu0 %vm14_vm1, %v11_v1  ;;  %114 = vmatpush3.msk.msra.mxu0 %vm21_vm0, %v13_v0 }
   0x4   :  { %116 = vmatmul.mubr.msk.f32.vlgmr.msra.gmra.mrb[0].mxu0 %vm14_vm1, %v12_v2 }
  0xd7   :  { %v117_v3 = vpop.f32.mrb[0].mxu0 }
  0xd8   :  { %102 = vst.msk [vmem:[%s150_s2 + $0x8] sm:$0xff] %vm100_vm2, %v117_v3  ;;  %v91_v4 = vpop.f32.mrb[1].mxu0 }
  0xd9   :  { %101 = vst.msk [vmem:[%s150_s2] sm:$0xff] %vm100_vm2, %v91_v4 }

// kernel: saliency_forward.17
= control target key start
LH: loop header
LB: loop body
LE: loop exit
PB: predicated region body
PF: predicated region fallthrough
CT: control target
= control target key end

     0   :  { %vm40_vm0 = vcmask 64512   ;;  %vm174_vm1 = vcmask 1041408   ;;  %vm161_vm2 = vcmask 15360   ;;  %vm379_vm3 = vcmask 7168   ;;  %s557_s2 = inlined_call_operand.vmem [shape: f32[8,2], index: 2, kind: input, shape index: {}]   ;;  %s558_s1 = inlined_call_operand.vmem [shape: f32[32,8], index: 1, kind: input, shape index: {}]   ;;  %s559_s4 = inlined_call_operand.vmem [shape: f32[2,2], index: 4, kind: input, shape index: {}]   ;;  %s560_s0 = inlined_call_operand.vmem [shape: f32[32,2], index: 0, kind: input, shape index: {}]   ;;  %s561_s3 = inlined_call_operand.vmem [shape: f32[1,2], index: 3, kind: input, shape index: {}]   ;;  %s562_s6 = inlined_call_operand.vmem [shape: f32[2,1], index: 6, kind: input, shape index: {}]   ;;  %s563_s7 = inlined_call_operand.<no memory space> [shape: f32[1,1], index: 7, kind: input, shape index: {}]   ;;  %s564_s5 = inlined_call_operand.vmem [shape: f32[1,2], index: 5, kind: input, shape index: {}]   ;;  %s565_s8 = inlined_call_operand.vmem [shape: f32[32,1], index: 8, kind: output, shape index: {}]  }
   0x1   :  { %v35_v0 = vld [vmem:[%s557_s2] sm:$0xff]  ;;  %v32_v2 = vld [vmem:[%s558_s1 + $0x8] sm:$0xff]  ;;  %v33_v3 = vld [vmem:[%s558_s1 + $0x10] sm:$0xff]  ;;  %v13_v28 = vstv %s563_s7 }
   0x2   :  { %v31_v1 = vld [vmem:[%s558_s1] sm:$0xff]  ;;  %420 = vmatprep.subr.mxu0 %v35_v0  ;;  %444 = vmatprep.subr.mxu1 %v35_v0  ;;  %v34_v4 = vld [vmem:[%s558_s1 + $0x18] sm:$0xff]  ;;  %v37_v6 = vld [vmem:[%s560_s0 + $0x8] sm:$0xff]  ;;  %14 = vst [vmem:[#allocation2] sm:$0x1] %v13_v28 }
   0x3   :  { %422 = vmatprep.mubr.msk.f32.mxu0 %vm40_vm0, %v31_v1  ;;  %421 = vmatpush3.msra.mxu0 %v35_v0  ;;  %v153_v5 = vld [vmem:[%s559_s4] sm:$0x3]  ;;  %v39_v10 = vld [vmem:[%s560_s0 + $0x18] sm:$0xff]  ;;  %v38_v13 = vld [vmem:[%s560_s0 + $0x10] sm:$0xff] }
   0x4   :  { %423 = vmatmul.mubr.msk.f32.vlgmr.msra.gmra.mrb[0].mxu0 %vm40_vm0, %v32_v2  ;;  %445 = vmatpush3.msra.mxu1 %v35_v0  ;;  %v36_v7 = vld [vmem:[%s560_s0] sm:$0xff] }
   0x5   :  { %425 = vmatprep.mubr.msk.f32.mxu1 %vm40_vm0, %v33_v3  ;;  %428 = vmatprep.subr.msk.mxu1 %vm174_vm1, %v153_v5  ;;  %v392_v9 = vld [vmem:[%s561_s3] ss:$0 sm:$0xff] }
   0x6   :  { %426 = vmatmul.mubr.msk.f32.vlgmr.msra.gmra.mrb[0].mxu1 %vm40_vm0, %v34_v4  ;;  %v271_v27 = vld [vmem:[%s562_s6] sm:$0x3] }
   0x7   :  { %429 = vmatpush3.msk.msra.mxu1 %vm174_vm1, %v153_v5  ;;  %436 = vmatprep.subr.msk.mxu0 %vm174_vm1, %v271_v27  ;;  %v393_v29 = vld [vmem:[%s564_s5] ss:$0 sm:$0xff] }
   0x8   :  { %437 = vmatpush3.msk.msra.mxu0 %vm174_vm1, %v271_v27 }
   0x9   :  { %v399_v46 = vld [vmem:[#allocation2] ss:$0 sm:$0xff] }
  0xd7   :  { %v424_v8 = vpop.f32.mrb[0].mxu0 }
  0xd8   :  { %v125_v11 = vadd.f32 %v424_v8, %v37_v6  ;;  %v119_v12 = vpop.f32.mrb[1].mxu0 }
  0xd9   :  { %v120_v14 = vadd.f32 %v119_v12, %v36_v7  ;;  %v427_v15 = vpop.f32.mrb[0].mxu1 }
  0xda   :  { %v146_v16 = vadd.f32 %v392_v9, %v125_v11  ;;  %v135_v17 = vadd.f32 %v427_v15, %v39_v10  ;;  %v129_v18 = vpop.f32.mrb[1].mxu1 }
  0xdb   :  { %v145_v19 = vadd.f32 %v392_v9, %v120_v14  ;;  %v130_v20 = vadd.f32 %v129_v18, %v38_v13 }
  0xdc   :  { %v150_v23 = vmax.f32 %v146_v16, 0.0  ;;  %v148_v24 = vadd.f32 %v392_v9, %v135_v17 }
  0xdd   :  { %v149_v21 = vmax.f32 %v145_v19, 0.0  ;;  %v147_v22 = vadd.f32 %v392_v9, %v130_v20 }
  0xde   :  { %v152_v26 = vmax.f32 %v148_v24, 0.0 }
  0xdf   :  { %v151_v25 = vmax.f32 %v147_v22, 0.0  ;;  %430 = vmatprep.mubr.msk.f32.mxu1 %vm161_vm2, %v149_v21 }
  0xe0   :  { %431 = vmatmul.mubr.msk.f32.vlgmr.msra.gmra.mrb[2].mxu1 %vm161_vm2, %v150_v23 }
  0xe1   :  { %433 = vmatprep.mubr.msk.f32.mxu1 %vm161_vm2, %v151_v25 }
  0xe4   :  { %434 = vmatmul.mubr.msk.f32.gmra.mrb[4].mxu1 %vm161_vm2, %v152_v26 }
 0x1b3   :  { %v432_v30 = vpop.f32.mrb[2].mxu1 }
 0x1b4   :  { %v250_v31 = vadd.f32 %v432_v30, %v393_v29  ;;  %v244_v32 = vpop.f32.mrb[3].mxu1 }
 0x1b5   :  { %v245_v33 = vadd.f32 %v393_v29, %v244_v32 }
 0x1b6   :  { %v264_v34 = vadd.f32 %v250_v31, %v150_v23 }
 0x1b7   :  { %v263_v35 = vadd.f32 %v245_v33, %v149_v21  ;;  %v435_v36 = vpop.f32.mrb[4].mxu1 }
 0x1b8   :  { %v260_v37 = vadd.f32 %v435_v36, %v393_v29  ;;  %v254_v38 = vpop.f32.mrb[5].mxu1  ;;  %v268_v41 = vmax.f32 %v264_v34, 0.0 }
 0x1b9   :  { %v267_v39 = vmax.f32 %v263_v35, 0.0  ;;  %v255_v40 = vadd.f32 %v393_v29, %v254_v38 }
 0x1ba   :  { %v266_v42 = vadd.f32 %v260_v37, %v152_v26 }
 0x1bb   :  { %v265_v43 = vadd.f32 %v255_v40, %v151_v25  ;;  %438 = vmatprep.mubr.msk.f32.mxu0 %vm161_vm2, %v267_v39 }
 0x1bc   :  { %439 = vmatmul.mubr.msk.f32.vlgmr.msra.gmra.mrb[2].mxu0 %vm161_vm2, %v268_v41  ;;  %v270_v45 = vmax.f32 %v266_v42, 0.0 }
 0x1bd   :  { %v269_v44 = vmax.f32 %v265_v43, 0.0 }
 0x1bf   :  { %441 = vmatprep.mubr.msk.f32.mxu0 %vm161_vm2, %v269_v44 }
 0x1c0   :  { %442 = vmatmul.mubr.msk.f32.gmra.mrb[4].mxu0 %vm161_vm2, %v270_v45 }
 0x28f   :  { %v440_v47 = vpop.f32.mrb[2].mxu0 }
 0x290   :  { %v366_v48 = vadd.f32 %v440_v47, %v399_v46  ;;  %v360_v49 = vpop.f32.mrb[3].mxu0 }
 0x291   :  { %v361_v50 = vadd.f32 %v399_v46, %v360_v49 }
 0x292   :  { %381 = vst.msk [vmem:[%s565_s8 + $0x8] sm:$0xff] %vm379_vm3, %v366_v48 }
 0x293   :  { %380 = vst.msk [vmem:[%s565_s8] sm:$0xff] %vm379_vm3, %v361_v50  ;;  %v443_v51 = vpop.f32.mrb[4].mxu0 }
 0x294   :  { %v376_v52 = vadd.f32 %v443_v51, %v399_v46  ;;  %v370_v53 = vpop.f32.mrb[5].mxu0 }
 0x295   :  { %v371_v54 = vadd.f32 %v399_v46, %v370_v53 }
 0x296   :  { %383 = vst.msk [vmem:[%s565_s8 + $0x18] sm:$0xff] %vm379_vm3, %v376_v52 }
 0x297   :  { %382 = vst.msk [vmem:[%s565_s8 + $0x10] sm:$0xff] %vm379_vm3, %v371_v54 }

</bundles_post_ra>
